<compile_context>
chip_gen: v6e
topology: v6e:2x2x1
jax: 0.10.0
libtpu: 0.0.40
codegen_flags: <defaults>
</compile_context>

<pallas_src>
import functools

import jax
import jax.numpy as jnp
from jax.experimental import pallas as pl
from jax.experimental.pallas import tpu as pltpu


# ----------------------------- configuration --------------------------------
IN_SIZE = 8
HISTORY_IN_SIZE = 16
HISTORY_OUT_SIZE = 8
ENCODER_LAYER_SIZES = [32, 32]
ENCODER_NONLIN = "relu"
LAYER_SIZES = [32, 32, 32]
NONLIN = "relu"
N_TARGETS = 4

FEATURES = IN_SIZE + HISTORY_IN_SIZE          # 24 raw input features
W_PAD = 32                                    # uniform padded layer width
N_ENC_HIDDEN = len(ENCODER_LAYER_SIZES)       # encoder hidden linears (last fused away)
N_MAIN = len(LAYER_SIZES) + 1                 # main-net linears

# Grid over the batch.  1 => single grid step (best on single-TC v5e/v6e).
# On v7x set NUM_TILES = 2 (and optionally pltpu.CORE_PARALLEL) to use both TCs.
NUM_TILES = 1

assert W_PAD % 8 == 0
assert W_PAD >= FEATURES
assert W_PAD >= max(ENCODER_LAYER_SIZES + LAYER_SIZES + [HISTORY_OUT_SIZE, N_TARGETS])


def _nonlin(name, x):
    name = name.lower()
    if name == "relu":
        return jnp.maximum(x, 0.0)
    elif name == "sigmoid":
        return jax.nn.sigmoid(x)
    raise NotImplementedError(name)


# ------------------------------- kernel -------------------------------------
def make_kernel(n_enc_hidden, n_main_layers, enc_nonlin, main_nonlin, n_targets):
    """Fused (encoder + main MLP) forward.

    Refs:
      x_ref : bf16 [TB, W_PAD]            (g | history | zero-pad)
      w_ref : bf16 [n_w, W_PAD, W_PAD]    weight slab
      b_ref : f32  [n_b, 1, W_PAD]        bias slab
      o_ref : f32  [TB, n_targets]
    Weight slab order: [We0_pad, We1, ..., Wg_pad, Wfuse, Wm1, ..., Wm_last_pad]
    Bias slab order  : [be0, be1, ..., b_fused, bm1, ..., bm_last_pad]
    """
    assert n_main_layers >= 2

    def kernel(x_ref, w_ref, b_ref, o_ref):
        x = x_ref[...]                                   # bf16 [TB, W_PAD]
        wi = 0
        bi = 0

        # ---- encoder hidden layers (final encoder linear is fused below) ----
        # TODO(synk): create_network's body is not shown; assumed
        # Linear -> nonlin per hidden layer, no activation after the final Linear.
        h = x
        for _ in range(n_enc_hidden):
            h = jnp.dot(h, w_ref[wi], preferred_element_type=jnp.float32) + b_ref[bi]
            h = _nonlin(enc_nonlin, h).astype(jnp.bfloat16)
            wi += 1
            bi += 1

        # ---- main layer 0 with the encoder's last linear folded in:
        #   net0(concat([g, enc_last(h)])) == x @ Wg_pad + h @ (W_enc_last @ Wh) + b_fused
        z = (jnp.dot(x, w_ref[wi], preferred_element_type=jnp.float32)
             + jnp.dot(h, w_ref[wi + 1], preferred_element_type=jnp.float32)
             + b_ref[bi])
        z = _nonlin(main_nonlin, z).astype(jnp.bfloat16)
        wi += 2
        bi += 1

        # ---- middle main layers ----
        for _ in range(1, n_main_layers - 1):
            z = jnp.dot(z, w_ref[wi], preferred_element_type=jnp.float32) + b_ref[bi]
            z = _nonlin(main_nonlin, z).astype(jnp.bfloat16)
            wi += 1
            bi += 1

        # ---- final main layer (no activation); only the first n_targets cols valid
        zf = jnp.dot(z, w_ref[wi], preferred_element_type=jnp.float32) + b_ref[bi]
        o_ref[...] = zf[:, :n_targets].astype(o_ref.dtype)

    return kernel


# --------------------------- parameter preparation ---------------------------
def prepare_slabs(enc_params, main_params):
    """One-time wrapper-side weight plumbing (call once and cache the result)."""
    n_enc_hidden = len(enc_params) - 1
    n_main = len(main_params)
    n_w = n_enc_hidden + 2 + (n_main - 1)
    n_b = n_enc_hidden + 1 + (n_main - 1)
    w_slab = jnp.zeros((n_w, W_PAD, W_PAD), jnp.float32)
    b_slab = jnp.zeros((n_b, 1, W_PAD), jnp.float32)

    wi = bi = 0
    # Encoder hidden layer 0 consumes the padded x tile directly: its weight
    # sits at the history-feature rows (zero rows elsewhere -> g is ignored).
    w0, b0 = enc_params[0]
    w_slab = w_slab.at[wi, IN_SIZE:IN_SIZE + HISTORY_IN_SIZE, :w0.shape[1]].set(w0)
    b_slab = b_slab.at[bi, 0, :b0.shape[1]].set(b0[0])
    wi += 1
    bi += 1
    for (w, b) in enc_params[1:-1]:
        w_slab = w_slab.at[wi, :w.shape[0], :w.shape[1]].set(w)
        b_slab = b_slab.at[bi, 0, :b.shape[1]].set(b[0])
        wi += 1
        bi += 1

    # Fuse the encoder's last linear into the main net's first layer (h-branch).
    we_last, be_last = enc_params[-1]             # [enc_hidden, HOUT]
    wm0, bm0 = main_params[0]                     # [IN_SIZE + HOUT, L0]
    wg = wm0[:IN_SIZE, :]
    wh = wm0[IN_SIZE:, :]
    w_fuse = we_last @ wh                         # f32 fusion, bf16 cast at the end
    b_fuse = bm0 + be_last @ wh
    # g-branch weight consumes the padded x tile (rows 0..IN_SIZE-1 valid).
    w_slab = w_slab.at[wi, :IN_SIZE, :wg.shape[1]].set(wg)
    wi += 1
    w_slab = w_slab.at[wi, :w_fuse.shape[0], :w_fuse.shape[1]].set(w_fuse)
    wi += 1
    b_slab = b_slab.at[bi, 0, :b_fuse.shape[1]].set(b_fuse[0])
    bi += 1

    # Remaining main linears (last one zero-padded along fan_out to W_PAD).
    for (w, b) in main_params[1:]:
        w_slab = w_slab.at[wi, :w.shape[0], :w.shape[1]].set(w)
        b_slab = b_slab.at[bi, 0, :b.shape[1]].set(b[0])
        wi += 1
        bi += 1

    return w_slab.astype(jnp.bfloat16), b_slab


# ------------------------------- forward -------------------------------------
@functools.partial(jax.jit, static_argnames=("num_tiles",))
def reptile_encoder_forward(x, w_slab, b_slab, *, num_tiles=NUM_TILES):
    """x: f32 [B, IN_SIZE + HISTORY_IN_SIZE].  Returns f32 [B, N_TARGETS]."""
    B, F = x.shape
    assert F == FEATURES
    assert B % num_tiles == 0
    tile = B // num_tiles
    assert tile % 8 == 0

    # bf16 cast + feature pad (single fused XLA op under jit; halves input DMA).
    x_pad = jnp.pad(x.astype(jnp.bfloat16), ((0, 0), (0, W_PAD - F)))

    kernel = make_kernel(N_ENC_HIDDEN, N_MAIN, ENCODER_NONLIN, NONLIN, N_TARGETS)
    dims = ("parallel",) if num_tiles > 1 else ("arbitrary",)

    return pl.pallas_call(
        kernel,
        out_shape=jax.ShapeDtypeStruct((B, N_TARGETS), jnp.float32),
        grid_spec=pltpu.PrefetchScalarGridSpec(
            num_scalar_prefetch=0,
            grid=(num_tiles,),
            in_specs=[
                pl.BlockSpec((tile, W_PAD), lambda i: (i, 0)),
                # Param slabs: block index never changes -> DMA'd once, revisited.
                pl.BlockSpec(w_slab.shape, lambda i: (0, 0, 0)),
                pl.BlockSpec(b_slab.shape, lambda i: (0, 0, 0)),
            ],
            out_specs=pl.BlockSpec((tile, N_TARGETS), lambda i: (i, 0)),
        ),
        compiler_params=pltpu.CompilerParams(dimension_semantics=dims),
    )(x_pad, w_slab, b_slab)


# ------------------------- parameter construction ---------------------------
def init_linear(key, fan_in, fan_out):
    kw, kb = jax.random.split(key)
    w = jax.random.normal(kw, (fan_in, fan_out), jnp.float32) * 0.1
    b = jax.random.normal(kb, (1, fan_out), jnp.float32) * 0.1
    return w, b


def build_params(key):
    enc_dims = [HISTORY_IN_SIZE] + ENCODER_LAYER_SIZES + [HISTORY_OUT_SIZE]
    main_dims = [IN_SIZE + HISTORY_OUT_SIZE] + LAYER_SIZES + [N_TARGETS]
    keys = jax.random.split(key, (len(enc_dims) - 1) + (len(main_dims) - 1))
    kit = iter(keys)
    enc = [init_linear(next(kit), enc_dims[i], enc_dims[i + 1])
           for i in range(len(enc_dims) - 1)]
    main = [init_linear(next(kit), main_dims[i], main_dims[i + 1])
            for i in range(len(main_dims) - 1)]
    return enc, main


# ---------------------------- JAX references ---------------------------------
def reference_f32(x, enc_params, main_params):
    """Unfused full-f32 forward, mirroring the torch module exactly."""
    g = x[:, :IN_SIZE]
    h = x[:, IN_SIZE:]
    for li, (w, b) in enumerate(enc_params):
        h = h @ w + b
        if li < len(enc_params) - 1:
            h = _nonlin(ENCODER_NONLIN, h)
    z = jnp.concatenate([g, h], axis=-1)
    for li, (w, b) in enumerate(main_params):
        z = z @ w + b
        if li < len(main_params) - 1:
            z = _nonlin(NONLIN, z)
    return z


def reference_from_slabs(x, w_slab, b_slab):
    """Plain-JAX mirror of the kernel math (same fusion, same bf16 casts)."""
    xb = jnp.pad(x.astype(jnp.bfloat16), ((0, 0), (0, W_PAD - FEATURES)))
    h = xb
    wi = bi = 0
    for _ in range(N_ENC_HIDDEN):
        h = jnp.dot(h, w_slab[wi], preferred_element_type=jnp.float32) + b_slab[bi]
        h = _nonlin(ENCODER_NONLIN, h).astype(jnp.bfloat16)
        wi += 1
        bi += 1
    z = (jnp.dot(xb, w_slab[wi], preferred_element_type=jnp.float32)
         + jnp.dot(h, w_slab[wi + 1], preferred_element_type=jnp.float32)
         + b_slab[bi])
    z = _nonlin(NONLIN, z).astype(jnp.bfloat16)
    wi += 2
    bi += 1
    for _ in range(1, N_MAIN - 1):
        z = jnp.dot(z, w_slab[wi], preferred_element_type=jnp.float32) + b_slab[bi]
        z = _nonlin(NONLIN, z).astype(jnp.bfloat16)
        wi += 1
        bi += 1
    zf = jnp.dot(z, w_slab[wi], preferred_element_type=jnp.float32) + b_slab[bi]
    return zf[:, :N_TARGETS]


# --------------------------------- main --------------------------------------
if __name__ == "__main__":
    key = jax.random.PRNGKey(0)
    k_params, k_x = jax.random.split(key)

    enc_params, main_params = build_params(k_params)
    BATCH = 256
    x = jax.random.normal(k_x, (BATCH, FEATURES), jnp.float32)

    # One-time weight preparation, hoisted out of the per-call path.
    w_slab, b_slab = prepare_slabs(enc_params, main_params)

    out = reptile_encoder_forward(x, w_slab, b_slab)
    out = jax.block_until_ready(out)
    assert out.shape == (BATCH, N_TARGETS)
    assert bool(jnp.all(jnp.isfinite(out)))

    # Tight check vs. a plain-JAX mirror of the kernel math (same fusion + bf16).
    ref_k = reference_from_slabs(x, w_slab, b_slab)
    assert jnp.allclose(out, ref_k, atol=2e-3, rtol=2e-3), (
        "max |diff| vs fused-bf16 ref = %g" % float(jnp.max(jnp.abs(out - ref_k))))

    # Loose check vs. the unfused full-f32 reference (bf16 rounding tolerance).
    ref_f = reference_f32(x, enc_params, main_params)
    assert jnp.allclose(out, ref_f, atol=5e-2, rtol=5e-2), (
        "max |diff| vs f32 ref = %g" % float(jnp.max(jnp.abs(out - ref_f))))

    print("KERNEL_OK")
</pallas_src>

<mosaic_0001>
module attributes {stable_mosaic.version = 11 : i64} {
  func.func @kernel(%arg0: i32, %arg1: memref<256x32xbf16, #tpu.memory_space<vmem>>, %arg2: memref<7x32x32xbf16, #tpu.memory_space<vmem>>, %arg3: memref<6x1x32xf32, #tpu.memory_space<vmem>>, %arg4: memref<256x4xf32, #tpu.memory_space<vmem>>) attributes {dimension_semantics = [#tpu.dimension_semantics<arbitrary>], iteration_bounds = array<i64: 1>, scalar_prefetch = 0 : i64, scratch_operands = 0 : i64, tpu.core_type = #tpu.core_type<tc>, window_params = [{transform_indices = @transform_0, window_bounds = array<i64: 256, 32>}, {pipeline_mode = #tpu.pipeline_mode<synchronous>, transform_indices = @transform_1, window_bounds = array<i64: 7, 32, 32>}, {pipeline_mode = #tpu.pipeline_mode<synchronous>, transform_indices = @transform_2, window_bounds = array<i64: 6, 1, 32>}, {transform_indices = @transform_3, window_bounds = array<i64: 256, 4>}]} {
    %c0 = arith.constant 0 : index
    %c0_0 = arith.constant 0 : index
    %0 = vector.load %arg1[%c0, %c0_0] : memref<256x32xbf16, #tpu.memory_space<vmem>>, vector<256x32xbf16>
    %c0_1 = arith.constant 0 : index
    %c0_2 = arith.constant 0 : index
    %c0_3 = arith.constant 0 : index
    %1 = vector.load %arg2[%c0_1, %c0_2, %c0_3] : memref<7x32x32xbf16, #tpu.memory_space<vmem>>, vector<1x32x32xbf16>
    %2 = vector.shape_cast %1 : vector<1x32x32xbf16> to vector<32x32xbf16>
    %cst = arith.constant dense<0.000000e+00> : vector<256x32xf32>
    %3 = tpu.matmul %0, %2, %cst {dimension_numbers = #tpu.dot_dimension_numbers<[1], [0], [0], [1], [0, 0, 1, 1], [], []>} : vector<256x32xbf16>, vector<32x32xbf16>, vector<256x32xf32> -> vector<256x32xf32>
    %c0_4 = arith.constant 0 : index
    %c0_5 = arith.constant 0 : index
    %c0_6 = arith.constant 0 : index
    %4 = vector.load %arg3[%c0_4, %c0_5, %c0_6] : memref<6x1x32xf32, #tpu.memory_space<vmem>>, vector<1x1x32xf32>
    %5 = vector.shape_cast %4 : vector<1x1x32xf32> to vector<1x32xf32>
    %6 = vector.broadcast %5 : vector<1x32xf32> to vector<256x32xf32>
    %7 = arith.addf %3, %6 : vector<256x32xf32>
    %cst_7 = arith.constant 0.000000e+00 : f32
    %8 = vector.broadcast %cst_7 : f32 to vector<256x32xf32>
    %9 = arith.maximumf %7, %8 : vector<256x32xf32>
    %10 = arith.truncf %9 : vector<256x32xf32> to vector<256x32xbf16>
    %c1 = arith.constant 1 : index
    %c0_8 = arith.constant 0 : index
    %c0_9 = arith.constant 0 : index
    %11 = vector.load %arg2[%c1, %c0_8, %c0_9] : memref<7x32x32xbf16, #tpu.memory_space<vmem>>, vector<1x32x32xbf16>
    %12 = vector.shape_cast %11 : vector<1x32x32xbf16> to vector<32x32xbf16>
    %cst_10 = arith.constant dense<0.000000e+00> : vector<256x32xf32>
    %13 = tpu.matmul %10, %12, %cst_10 {dimension_numbers = #tpu.dot_dimension_numbers<[1], [0], [0], [1], [0, 0, 1, 1], [], []>} : vector<256x32xbf16>, vector<32x32xbf16>, vector<256x32xf32> -> vector<256x32xf32>
    %c1_11 = arith.constant 1 : index
    %c0_12 = arith.constant 0 : index
    %c0_13 = arith.constant 0 : index
    %14 = vector.load %arg3[%c1_11, %c0_12, %c0_13] : memref<6x1x32xf32, #tpu.memory_space<vmem>>, vector<1x1x32xf32>
    %15 = vector.shape_cast %14 : vector<1x1x32xf32> to vector<1x32xf32>
    %16 = vector.broadcast %15 : vector<1x32xf32> to vector<256x32xf32>
    %17 = arith.addf %13, %16 : vector<256x32xf32>
    %cst_14 = arith.constant 0.000000e+00 : f32
    %18 = vector.broadcast %cst_14 : f32 to vector<256x32xf32>
    %19 = arith.maximumf %17, %18 : vector<256x32xf32>
    %20 = arith.truncf %19 : vector<256x32xf32> to vector<256x32xbf16>
    %c2 = arith.constant 2 : index
    %c0_15 = arith.constant 0 : index
    %c0_16 = arith.constant 0 : index
    %21 = vector.load %arg2[%c2, %c0_15, %c0_16] : memref<7x32x32xbf16, #tpu.memory_space<vmem>>, vector<1x32x32xbf16>
    %22 = vector.shape_cast %21 : vector<1x32x32xbf16> to vector<32x32xbf16>
    %cst_17 = arith.constant dense<0.000000e+00> : vector<256x32xf32>
    %23 = tpu.matmul %0, %22, %cst_17 {dimension_numbers = #tpu.dot_dimension_numbers<[1], [0], [0], [1], [0, 0, 1, 1], [], []>} : vector<256x32xbf16>, vector<32x32xbf16>, vector<256x32xf32> -> vector<256x32xf32>
    %c3 = arith.constant 3 : index
    %c0_18 = arith.constant 0 : index
    %c0_19 = arith.constant 0 : index
    %24 = vector.load %arg2[%c3, %c0_18, %c0_19] : memref<7x32x32xbf16, #tpu.memory_space<vmem>>, vector<1x32x32xbf16>
    %25 = vector.shape_cast %24 : vector<1x32x32xbf16> to vector<32x32xbf16>
    %cst_20 = arith.constant dense<0.000000e+00> : vector<256x32xf32>
    %26 = tpu.matmul %20, %25, %cst_20 {dimension_numbers = #tpu.dot_dimension_numbers<[1], [0], [0], [1], [0, 0, 1, 1], [], []>} : vector<256x32xbf16>, vector<32x32xbf16>, vector<256x32xf32> -> vector<256x32xf32>
    %27 = arith.addf %23, %26 : vector<256x32xf32>
    %c2_21 = arith.constant 2 : index
    %c0_22 = arith.constant 0 : index
    %c0_23 = arith.constant 0 : index
    %28 = vector.load %arg3[%c2_21, %c0_22, %c0_23] : memref<6x1x32xf32, #tpu.memory_space<vmem>>, vector<1x1x32xf32>
    %29 = vector.shape_cast %28 : vector<1x1x32xf32> to vector<1x32xf32>
    %30 = vector.broadcast %29 : vector<1x32xf32> to vector<256x32xf32>
    %31 = arith.addf %27, %30 : vector<256x32xf32>
    %cst_24 = arith.constant 0.000000e+00 : f32
    %32 = vector.broadcast %cst_24 : f32 to vector<256x32xf32>
    %33 = arith.maximumf %31, %32 : vector<256x32xf32>
    %34 = arith.truncf %33 : vector<256x32xf32> to vector<256x32xbf16>
    %c4 = arith.constant 4 : index
    %c0_25 = arith.constant 0 : index
    %c0_26 = arith.constant 0 : index
    %35 = vector.load %arg2[%c4, %c0_25, %c0_26] : memref<7x32x32xbf16, #tpu.memory_space<vmem>>, vector<1x32x32xbf16>
    %36 = vector.shape_cast %35 : vector<1x32x32xbf16> to vector<32x32xbf16>
    %cst_27 = arith.constant dense<0.000000e+00> : vector<256x32xf32>
    %37 = tpu.matmul %34, %36, %cst_27 {dimension_numbers = #tpu.dot_dimension_numbers<[1], [0], [0], [1], [0, 0, 1, 1], [], []>} : vector<256x32xbf16>, vector<32x32xbf16>, vector<256x32xf32> -> vector<256x32xf32>
    %c3_28 = arith.constant 3 : index
    %c0_29 = arith.constant 0 : index
    %c0_30 = arith.constant 0 : index
    %38 = vector.load %arg3[%c3_28, %c0_29, %c0_30] : memref<6x1x32xf32, #tpu.memory_space<vmem>>, vector<1x1x32xf32>
    %39 = vector.shape_cast %38 : vector<1x1x32xf32> to vector<1x32xf32>
    %40 = vector.broadcast %39 : vector<1x32xf32> to vector<256x32xf32>
    %41 = arith.addf %37, %40 : vector<256x32xf32>
    %cst_31 = arith.constant 0.000000e+00 : f32
    %42 = vector.broadcast %cst_31 : f32 to vector<256x32xf32>
    %43 = arith.maximumf %41, %42 : vector<256x32xf32>
    %44 = arith.truncf %43 : vector<256x32xf32> to vector<256x32xbf16>
    %c5 = arith.constant 5 : index
    %c0_32 = arith.constant 0 : index
    %c0_33 = arith.constant 0 : index
    %45 = vector.load %arg2[%c5, %c0_32, %c0_33] : memref<7x32x32xbf16, #tpu.memory_space<vmem>>, vector<1x32x32xbf16>
    %46 = vector.shape_cast %45 : vector<1x32x32xbf16> to vector<32x32xbf16>
    %cst_34 = arith.constant dense<0.000000e+00> : vector<256x32xf32>
    %47 = tpu.matmul %44, %46, %cst_34 {dimension_numbers = #tpu.dot_dimension_numbers<[1], [0], [0], [1], [0, 0, 1, 1], [], []>} : vector<256x32xbf16>, vector<32x32xbf16>, vector<256x32xf32> -> vector<256x32xf32>
    %c4_35 = arith.constant 4 : index
    %c0_36 = arith.constant 0 : index
    %c0_37 = arith.constant 0 : index
    %48 = vector.load %arg3[%c4_35, %c0_36, %c0_37] : memref<6x1x32xf32, #tpu.memory_space<vmem>>, vector<1x1x32xf32>
    %49 = vector.shape_cast %48 : vector<1x1x32xf32> to vector<1x32xf32>
    %50 = vector.broadcast %49 : vector<1x32xf32> to vector<256x32xf32>
    %51 = arith.addf %47, %50 : vector<256x32xf32>
    %cst_38 = arith.constant 0.000000e+00 : f32
    %52 = vector.broadcast %cst_38 : f32 to vector<256x32xf32>
    %53 = arith.maximumf %51, %52 : vector<256x32xf32>
    %54 = arith.truncf %53 : vector<256x32xf32> to vector<256x32xbf16>
    %c6 = arith.constant 6 : index
    %c0_39 = arith.constant 0 : index
    %c0_40 = arith.constant 0 : index
    %55 = vector.load %arg2[%c6, %c0_39, %c0_40] : memref<7x32x32xbf16, #tpu.memory_space<vmem>>, vector<1x32x32xbf16>
    %56 = vector.shape_cast %55 : vector<1x32x32xbf16> to vector<32x32xbf16>
    %cst_41 = arith.constant dense<0.000000e+00> : vector<256x32xf32>
    %57 = tpu.matmul %54, %56, %cst_41 {dimension_numbers = #tpu.dot_dimension_numbers<[1], [0], [0], [1], [0, 0, 1, 1], [], []>} : vector<256x32xbf16>, vector<32x32xbf16>, vector<256x32xf32> -> vector<256x32xf32>
    %c5_42 = arith.constant 5 : index
    %c0_43 = arith.constant 0 : index
    %c0_44 = arith.constant 0 : index
    %58 = vector.load %arg3[%c5_42, %c0_43, %c0_44] : memref<6x1x32xf32, #tpu.memory_space<vmem>>, vector<1x1x32xf32>
    %59 = vector.shape_cast %58 : vector<1x1x32xf32> to vector<1x32xf32>
    %60 = vector.broadcast %59 : vector<1x32xf32> to vector<256x32xf32>
    %61 = arith.addf %57, %60 : vector<256x32xf32>
    %62 = vector.extract_strided_slice %61 {offsets = [0, 0], sizes = [256, 4], strides = [1, 1]} : vector<256x32xf32> to vector<256x4xf32>
    %c0_45 = arith.constant 0 : index
    %c0_46 = arith.constant 0 : index
    %63 = vector.load %arg4[%c0_45, %c0_46] : memref<256x4xf32, #tpu.memory_space<vmem>>, vector<256x4xf32>
    tpu.vector_store %arg4[%c0_45, %c0_46], %62 {strides = array<i32>} : memref<256x4xf32, #tpu.memory_space<vmem>>, vector<256x4xf32>,
    return
  }
  func.func @transform_0(%arg0: i32) -> (i32, i32) {
    %c0_i32 = arith.constant 0 : i32
    %c0_i32_0 = arith.constant 0 : i32
    return %arg0, %c0_i32 : i32, i32
  }
  func.func @transform_1(%arg0: i32) -> (i32, i32, i32) {
    %c0_i32 = arith.constant 0 : i32
    %c0_i32_0 = arith.constant 0 : i32
    %c0_i32_1 = arith.constant 0 : i32
    %c0_i32_2 = arith.constant 0 : i32
    return %c0_i32, %c0_i32_0, %c0_i32_1 : i32, i32, i32
  }
  func.func @transform_2(%arg0: i32) -> (i32, i32, i32) {
    %c0_i32 = arith.constant 0 : i32
    %c0_i32_0 = arith.constant 0 : i32
    %c0_i32_1 = arith.constant 0 : i32
    %c0_i32_2 = arith.constant 0 : i32
    return %c0_i32, %c0_i32_0, %c0_i32_1 : i32, i32, i32
  }
  func.func @transform_3(%arg0: i32) -> (i32, i32) {
    %c0_i32 = arith.constant 0 : i32
    %c0_i32_0 = arith.constant 0 : i32
    return %arg0, %c0_i32 : i32, i32
  }
}

</mosaic_0001>

<bundles_post_ra>
// kernel: reptile_encoder_forward.1
= control target key start
LH: loop header
LB: loop body
LE: loop exit
PB: predicated region body
PF: predicated region fallthrough
CT: control target
= control target key end

     0   :  { %vm150_vm0 = vcmask 261120   ;;  %vm1980_vm1 = vcmask 31744   ;;  %s3284_s1 = inlined_call_operand.vmem [shape: bf16[7,32,32], index: 1, kind: input, shape index: {}]   ;;  %s3285_s0 = inlined_call_operand.vmem [shape: bf16[256,32], index: 0, kind: input, shape index: {}]   ;;  %s3286_s2 = inlined_call_operand.vmem [shape: f32[6,1,32], index: 2, kind: input, shape index: {}]   ;;  %s3287_s3 = inlined_call_operand.vmem [shape: f32[256,4], index: 3, kind: output, shape index: {}]  }
   0x1   :  { %v2576_v0 = vld [vmem:[%s3284_s1 + $0x8] sm:$0xff]   ;;  %v2577_v1 = vld [vmem:[%s3284_s1] sm:$0xff]   ;;  %v2647_v4 = vld [vmem:[%s3285_s0 + $0x10] sm:$0xff]  }
   0x2   :  { %2320 = vmatprep.subr.bf16.mxu0 %v2576_v0  ;;  %v2635_v2 = vld [vmem:[%s3285_s0] sm:$0xff]   ;;  %2572 = vmatprep.subr.bf16.mxu1 %v2576_v0  ;;  %v2642_v3 = vld [vmem:[%s3285_s0 + $0x8] sm:$0xff]   ;;  %v2668_v7 = vld [vmem:[%s3285_s0 + $0x50] sm:$0xff]  }
   0x3   :  { %2321 = vmatpush3.bf16.msra.mxu0 %v2576_v0  ;;  %2574 = vmatpush3.bf16.msra.mxu1 %v2576_v0  ;;  %v2654_v5 = vld [vmem:[%s3285_s0 + $0x40] sm:$0xff]   ;;  %v2661_v6 = vld [vmem:[%s3285_s0 + $0x48] sm:$0xff]   ;;  %v2675_v8 = vld [vmem:[%s3285_s0 + $0x18] sm:$0xff]  }
   0x4   :  { %2322 = vmatprep.subr.bf16.mxu0 %v2577_v1  ;;  %2324 = vmatprep.mubr.msk.bf16.mxu0 %vm150_vm0, %v2635_v2  ;;  %v2682_v9 = vld [vmem:[%s3285_s0 + $0x20] sm:$0xff]   ;;  %v2687_v10 = vld [vmem:[%s3285_s0 + $0x58] sm:$0xff]   ;;  %v2595_v13 = vld [vmem:[%s3284_s1 + $0x10] sm:$0xff]  }
   0x5   :  { %2573 = vmatprep.subr.bf16.mxu1 %v2577_v1  ;;  %2340 = vmatprep.mubr.msk.bf16.mxu1 %vm150_vm0, %v2654_v5  ;;  %v2692_v11 = vld [vmem:[%s3285_s0 + $0x60] sm:$0xff]   ;;  %v2594_v12 = vld [vmem:[%s3284_s1 + $0x18] sm:$0xff]   ;;  %v2707_v14 = vld [vmem:[%s3285_s0 + $0x28] sm:$0xff]  }
   0x6   :  { %v2712_v15 = vld [vmem:[%s3285_s0 + $0x30] sm:$0xff]   ;;  %v2721_v16 = vld [vmem:[%s3285_s0 + $0x68] sm:$0xff]   ;;  %v2737_v18 = vld [vmem:[%s3285_s0 + $0x38] sm:$0xff]  }
   0x7   :  { %2323 = vmatpush3.bf16.msra.mxu0 %v2577_v1  ;;  %2575 = vmatpush3.bf16.msra.mxu1 %v2577_v1  ;;  %v2728_v17 = vld [vmem:[%s3285_s0 + $0x70] sm:$0xff]   ;;  %v2744_v19 = vld [vmem:[%s3285_s0 + $0x78] sm:$0xff]   ;;  %v2596_v20 = vld [vmem:[%s3284_s1 + $0x28] sm:$0xff]  }
   0x8   :  { %2356 = vmatprep.subr.bf16.mxu1 %v2594_v12  ;;  %v2597_v21 = vld [vmem:[%s3284_s1 + $0x38] sm:$0xff]   ;;  %v2599_v22 = vld [vmem:[%s3284_s1 + $0x30] sm:$0xff]   ;;  %v2762_v25 = vld [vmem:[%s3286_s2] ss:$0 sm:$0xff] }
   0x9   :  { %2392 = vmatprep.subr.bf16.mxu0 %v2597_v21  ;;  %v2598_v46 = vld [vmem:[%s3284_s1 + $0x20] sm:$0xff]  }
   0xa   :  { %2325 = vmatmul.mubr.msk.bf16.vlgmr.msra.gmra.mxu0 %vm150_vm0, %v2642_v3  ;;  %2341 = vmatmul.mubr.msk.bf16.vlgmr.msra.gmra.mxu1 %vm150_vm0, %v2661_v6 }
   0xb   :  { %2328 = vmatprep.mubr.msk.bf16.mxu0 %vm150_vm0, %v2647_v4  ;;  %2344 = vmatprep.mubr.msk.bf16.mxu1 %vm150_vm0, %v2668_v7 }
   0xc   :  { %2357 = vmatpush3.bf16.msra.mxu1 %v2594_v12  ;;  %2393 = vmatpush3.bf16.msra.mxu0 %v2597_v21 }
   0xd   :  { %2358 = vmatprep.subr.bf16.mxu1 %v2595_v13  ;;  %2394 = vmatprep.subr.bf16.mxu0 %v2599_v22 }
  0x10   :  { %2359 = vmatpush3.bf16.msra.mxu1 %v2595_v13  ;;  %2395 = vmatpush3.bf16.msra.mxu0 %v2599_v22 }
  0x11   :  { %2428 = vmatprep.subr.bf16.mxu1 %v2596_v20 }
  0x12   :  { %2329 = vmatmul.mubr.msk.bf16.gmra.mxu0 %vm150_vm0, %v2675_v8  ;;  %2345 = vmatmul.mubr.msk.bf16.gmra.mxu1 %vm150_vm0, %v2687_v10 }
  0x13   :  { %2332 = vmatprep.mubr.msk.bf16.mxu0 %vm150_vm0, %v2682_v9  ;;  %2348 = vmatprep.mubr.msk.bf16.mxu1 %vm150_vm0, %v2692_v11 }
  0x1a   :  { %2333 = vmatmul.mubr.msk.bf16.gmra.mxu0 %vm150_vm0, %v2707_v14  ;;  %2349 = vmatmul.mubr.msk.bf16.gmra.mxu1 %vm150_vm0, %v2721_v16 }
  0x1b   :  { %2336 = vmatprep.mubr.msk.bf16.mxu0 %vm150_vm0, %v2712_v15  ;;  %2352 = vmatprep.mubr.msk.bf16.mxu1 %vm150_vm0, %v2728_v17 }
  0x22   :  { %2337 = vmatmul.mubr.msk.bf16.gmra.mxu0 %vm150_vm0, %v2737_v18  ;;  %2353 = vmatmul.mubr.msk.bf16.gmra.mxu1 %vm150_vm0, %v2744_v19 }
  0xca   :  { %v2326_v23 = vpop.f32.mrf.mxu0  ;;  %v2764_v26 = vpop.f32.mrf.mxu1 }
  0xcb   :  { %v242_v31 = vadd.f32 %v2326_v23, %v2762_v25 }
  0xcc   :  { %v233_v24 = vpop.f32.mrf.mxu0  ;;  %v297_v30 = vpop.f32.mrf.mxu1 }
  0xcd   :  { %v234_v28 = vadd.f32 %v2762_v25, %v233_v24  ;;  %v362_v40 = vmax.f32 %v242_v31, 0.0 }
  0xce   :  { %v2327_v27 = vpop.f32.mrf.mxu0  ;;  %v2770_v34 = vpop.f32.mrf.mxu1 }
  0xcf   :  { %v245_v29 = vadd.f32 %v2327_v27, %v2762_v25  ;;  %v360_v37 = vmax.f32 %v234_v28, 0.0 }
  0xd0   :  { %v236_v32 = vpop.f32.mrf.mxu0  ;;  %v300_v39 = vpop.f32.mrf.mxu1 }
  0xd1   :  { %v237_v33 = vadd.f32 %v2762_v25, %v236_v32  ;;  %v363_v35 = vmax.f32 %v245_v29, 0.0 }
  0xd2   :  { %v2330_v36 = vpop.f32.mrf.mxu0  ;;  %v2772_v43 = vpop.f32.mrf.mxu1 }
  0xd3   :  { %v361_v38 = vmax.f32 %v237_v33, 0.0  ;;  %v393_v44 = vpack.c.bf16 %v363_v35, %v362_v40  ;;  %v258_v50 = vadd.f32 %v2330_v36, %v2762_v25  ;;  %v298_v33 = vadd.f32 %v2762_v25, %v297_v30 }
  0xd4   :  { %v249_v41 = vpop.f32.mrf.mxu0  ;;  %v313_v49 = vpop.f32.mrf.mxu1  ;;  %v301_v35 = vadd.f32 %v2762_v25, %v300_v39 }
  0xd5   :  { %v392_v42 = vpack.c.bf16 %v361_v38, %v360_v37  ;;  %v250_v47 = vadd.f32 %v2762_v25, %v249_v41  ;;  %v366_v59 = vmax.f32 %v258_v50, 0.0 }
  0xd6   :  { %v2331_v45 = vpop.f32.mrf.mxu0  ;;  %v2783_v53 = vpop.f32.mrf.mxu1  ;;  %v377_v30 = vmax.f32 %v301_v35, 0.0 }
  0xd7   :  { %v261_v48 = vadd.f32 %v2331_v45, %v2762_v25  ;;  %2360 = vmatprep.mubr.msk.bf16.mxu1 %vm150_vm0, %v392_v42  ;;  %v364_v56 = vmax.f32 %v250_v47, 0.0  ;;  %v376_v45 = vmax.f32 %v298_v33, 0.0 }
  0xd8   :  { %v252_v51 = vpop.f32.mrf.mxu0  ;;  %2361 = vmatmul.mubr.msk.bf16.vlgmr.msra.gmra.mxu1 %vm150_vm0, %v393_v44  ;;  %v316_v58 = vpop.f32.mrf.mxu1 }
  0xd9   :  { %v253_v52 = vadd.f32 %v2762_v25, %v252_v51  ;;  %2429 = vmatpush3.bf16.msra.mxu1 %v2596_v20  ;;  %v367_v54 = vmax.f32 %v261_v48, 0.0 }
  0xda   :  { %v2334_v55 = vpop.f32.mrf.mxu0  ;;  %2430 = vmatprep.subr.bf16.mxu1 %v2598_v46  ;;  %v2785_v0 = vpop.f32.mrf.mxu1 }
  0xdb   :  { %v365_v57 = vmax.f32 %v253_v52, 0.0  ;;  %v395_v62 = vpack.c.bf16 %v367_v54, %v366_v59  ;;  %v274_v13 = vadd.f32 %v2334_v55, %v2762_v25  ;;  %v400_v54 = vpack.c.bf16 %v377_v30, %v376_v45 }
  0xdc   :  { %v265_v60 = vpop.f32.mrf.mxu0  ;;  %v329_v24 = vpop.f32.mrf.mxu1  ;;  %v314_v55 = vadd.f32 %v2762_v25, %v313_v49 }
  0xdd   :  { %v394_v61 = vpack.c.bf16 %v365_v57, %v364_v56  ;;  %2431 = vmatpush3.bf16.msra.mxu1 %v2598_v46  ;;  %v266_v1 = vadd.f32 %v2762_v25, %v265_v60  ;;  %v370_v29 = vmax.f32 %v274_v13, 0.0  ;;  %v317_v56 = vadd.f32 %v2762_v25, %v316_v58 }
  0xde   :  { %v2335_v63 = vpop.f32.mrf.mxu0  ;;  %v2351_v38 = vpop.f32.mrf.mxu1  ;;  %v306_v57 = vadd.f32 %v2764_v26, %v2762_v25  ;;  %v309_v60 = vadd.f32 %v2770_v34, %v2762_v25  ;;  %v330_v13 = vadd.f32 %v2762_v25, %v329_v24  ;;  %v322_v34 = vadd.f32 %v2772_v43, %v2762_v25 }
  0xdf   :  { %v277_v12 = vadd.f32 %v2335_v63, %v2762_v25  ;;  %2364 = vmatprep.mubr.msk.bf16.mxu1 %vm150_vm0, %v394_v61  ;;  %v368_v27 = vmax.f32 %v266_v1, 0.0  ;;  %v381_v63 = vmax.f32 %v317_v56, 0.0  ;;  %v338_v43 = vadd.f32 %v2785_v0, %v2762_v25 }
  0xe0   :  { %v268_v20 = vpop.f32.mrf.mxu0  ;;  %2365 = vmatmul.mubr.msk.bf16.gmra.mxu1 %vm150_vm0, %v395_v62  ;;  %v332_v39 = vpop.f32.mrf.mxu1  ;;  %v380_v62 = vmax.f32 %v314_v55, 0.0  ;;  %v378_v1 = vmax.f32 %v306_v57, 0.0  ;;  %v379_v49 = vmax.f32 %v309_v60, 0.0 }
  0xe1   :  { %v269_v21 = vadd.f32 %v2762_v25, %v268_v20  ;;  %v371_v22 = vmax.f32 %v277_v12, 0.0  ;;  %v333_v26 = vadd.f32 %v2762_v25, %v332_v39 }
  0xe2   :  { %v2338_v23 = vpop.f32.mrf.mxu0  ;;  %v2354_v61 = vpop.f32.mrf.mxu1  ;;  %v402_v58 = vpack.c.bf16 %v381_v63, %v380_v62  ;;  %v401_v20 = vpack.c.bf16 %v379_v49, %v378_v1 }
  0xe3   :  { %v369_v28 = vmax.f32 %v269_v21, 0.0  ;;  %v397_v36 = vpack.c.bf16 %v371_v22, %v370_v29  ;;  %v290_v42 = vadd.f32 %v2338_v23, %v2762_v25  ;;  %v325_v21 = vadd.f32 %v2783_v53, %v2762_v25 }
  0xe4   :  { %v281_v31 = vpop.f32.mrf.mxu0  ;;  %v345_v12 = vpop.f32.mrf.mxu1  ;;  %v384_v23 = vmax.f32 %v330_v13, 0.0  ;;  %v341_v53 = vadd.f32 %v2351_v38, %v2762_v25  ;;  %v354_v45 = vadd.f32 %v2354_v61, %v2762_v25 }
  0xe5   :  { %v396_v32 = vpack.c.bf16 %v369_v28, %v368_v27  ;;  %v282_v40 = vadd.f32 %v2762_v25, %v281_v31  ;;  %v374_v51 = vmax.f32 %v290_v42, 0.0  ;;  %v385_v27 = vmax.f32 %v333_v26, 0.0 }
  0xe6   :  { %v2339_v37 = vpop.f32.mrf.mxu0  ;;  %v2355_v22 = vpop.f32.mrf.mxu1  ;;  %v382_v28 = vmax.f32 %v322_v34, 0.0  ;;  %v383_v29 = vmax.f32 %v325_v21, 0.0  ;;  %v390_v0 = vmax.f32 %v354_v45, 0.0 }
  0xe7   :  { %v293_v41 = vadd.f32 %v2339_v37, %v2762_v25  ;;  %2368 = vmatprep.mubr.msk.bf16.mxu1 %vm150_vm0, %v396_v32  ;;  %v372_v48 = vmax.f32 %v282_v40, 0.0  ;;  %v404_v24 = vpack.c.bf16 %v385_v27, %v384_v23  ;;  %v346_v32 = vadd.f32 %v2762_v25, %v345_v12 }
  0xe8   :  { %v284_v44 = vpop.f32.mrf.mxu0  ;;  %2369 = vmatmul.mubr.msk.bf16.gmra.mxu1 %vm150_vm0, %v397_v36  ;;  %v348_v31 = vpop.f32.mrf.mxu1  ;;  %v403_v35 = vpack.c.bf16 %v383_v29, %v382_v28  ;;  %v386_v40 = vmax.f32 %v338_v43, 0.0 }
  0xe9   :  { %v285_v46 = vadd.f32 %v2762_v25, %v284_v44  ;;  %v375_v47 = vmax.f32 %v293_v41, 0.0  ;;  %v349_v33 = vadd.f32 %v2762_v25, %v348_v31  ;;  %v388_v36 = vmax.f32 %v346_v32, 0.0 }
  0xea   :  { %v387_v41 = vmax.f32 %v341_v53, 0.0 }
  0xeb   :  { %v373_v50 = vmax.f32 %v285_v46, 0.0  ;;  %v399_v59 = vpack.c.bf16 %v375_v47, %v374_v51  ;;  %v389_v37 = vmax.f32 %v349_v33, 0.0  ;;  %v357_v46 = vadd.f32 %v2355_v22, %v2762_v25 }
  0xec   :  { %v405_v44 = vpack.c.bf16 %v387_v41, %v386_v40 }
  0xed   :  { %v398_v52 = vpack.c.bf16 %v373_v50, %v372_v48  ;;  %v406_v42 = vpack.c.bf16 %v389_v37, %v388_v36  ;;  %v391_v38 = vmax.f32 %v357_v46, 0.0  ;;  %v2601_v48 = vld [vmem:[%s3284_s1 + $0x40] sm:$0xff]  }
  0xef   :  { %2372 = vmatprep.mubr.msk.bf16.mxu1 %vm150_vm0, %v398_v52  ;;  %v407_v30 = vpack.c.bf16 %v391_v38, %v390_v0 }
  0xf0   :  { %2373 = vmatmul.mubr.msk.bf16.gmra.mxu1 %vm150_vm0, %v399_v59 }
  0xf1   :  { %2376 = vmatprep.mubr.msk.bf16.mxu1 %vm150_vm0, %v400_v54 }
  0xf8   :  { %2377 = vmatmul.mubr.msk.bf16.gmra.mxu1 %vm150_vm0, %v401_v20 }
  0xf9   :  { %2380 = vmatprep.mubr.msk.bf16.mxu1 %vm150_vm0, %v402_v58 }
 0x100   :  { %2381 = vmatmul.mubr.msk.bf16.gmra.mxu1 %vm150_vm0, %v403_v35 }
 0x101   :  { %2384 = vmatprep.mubr.msk.bf16.mxu1 %vm150_vm0, %v404_v24 }
 0x108   :  { %2385 = vmatmul.mubr.msk.bf16.gmra.mxu1 %vm150_vm0, %v405_v44 }
 0x109   :  { %2388 = vmatprep.mubr.msk.bf16.mxu1 %vm150_vm0, %v406_v42 }
 0x110   :  { %2389 = vmatmul.mubr.msk.bf16.gmra.mxu1 %vm150_vm0, %v407_v30 }
 0x111   :  { %2432 = vmatprep.mubr.msk.bf16.mxu1 %vm150_vm0, %v2635_v2  ;;  %v2600_v2 = vld [vmem:[%s3284_s1 + $0x48] sm:$0xff]  }
 0x112   :  { %2464 = vmatprep.subr.bf16.mxu0 %v2600_v2 }
 0x118   :  { %2433 = vmatmul.mubr.msk.bf16.vlgmr.msra.gmra.mxu1 %vm150_vm0, %v2642_v3 }
 0x119   :  { %2436 = vmatprep.mubr.msk.bf16.mxu1 %vm150_vm0, %v2647_v4 }
 0x120   :  { %2437 = vmatmul.mubr.msk.bf16.gmra.mxu1 %vm150_vm0, %v2675_v8 }
 0x121   :  { %2440 = vmatprep.mubr.msk.bf16.mxu1 %vm150_vm0, %v2682_v9 }
 0x128   :  { %2441 = vmatmul.mubr.msk.bf16.gmra.mxu1 %vm150_vm0, %v2707_v14 }
 0x129   :  { %2444 = vmatprep.mubr.msk.bf16.mxu1 %vm150_vm0, %v2712_v15 }
 0x130   :  { %2445 = vmatmul.mubr.msk.bf16.gmra.mxu1 %vm150_vm0, %v2737_v18 }
 0x131   :  { %2448 = vmatprep.mubr.msk.bf16.mxu1 %vm150_vm0, %v2654_v5  ;;  %v2868_v5 = vld [vmem:[%s3286_s2 + $0x1] ss:$0 sm:$0xff] }
 0x138   :  { %2449 = vmatmul.mubr.msk.bf16.gmra.mxu1 %vm150_vm0, %v2661_v6 }
 0x139   :  { %2452 = vmatprep.mubr.msk.bf16.mxu1 %vm150_vm0, %v2668_v7 }
 0x140   :  { %2453 = vmatmul.mubr.msk.bf16.gmra.mxu1 %vm150_vm0, %v2687_v10 }
 0x141   :  { %2456 = vmatprep.mubr.msk.bf16.mxu1 %vm150_vm0, %v2692_v11 }
 0x148   :  { %2457 = vmatmul.mubr.msk.bf16.gmra.mxu1 %vm150_vm0, %v2721_v16 }
 0x149   :  { %2460 = vmatprep.mubr.msk.bf16.mxu1 %vm150_vm0, %v2728_v17 }
 0x150   :  { %2461 = vmatmul.mubr.msk.bf16.gmra.mxu1 %vm150_vm0, %v2744_v19 }
 0x198   :  { %v2362_v3 = vpop.f32.mrf.mxu1 }
 0x199   :  { %v524_v9 = vadd.f32 %v2362_v3, %v2868_v5 }
 0x19a   :  { %v515_v4 = vpop.f32.mrf.mxu1 }
 0x19b   :  { %v516_v7 = vadd.f32 %v2868_v5, %v515_v4  ;;  %v644_v18 = vmax.f32 %v524_v9, 0.0 }
 0x19c   :  { %v2363_v6 = vpop.f32.mrf.mxu1 }
 0x19d   :  { %v527_v8 = vadd.f32 %v2363_v6, %v2868_v5  ;;  %v642_v16 = vmax.f32 %v516_v7, 0.0 }
 0x19e   :  { %v518_v10 = vpop.f32.mrf.mxu1 }
 0x19f   :  { %v519_v11 = vadd.f32 %v2868_v5, %v518_v10  ;;  %v645_v14 = vmax.f32 %v527_v8, 0.0 }
 0x1a0   :  { %v2366_v15 = vpop.f32.mrf.mxu1 }
 0x1a1   :  { %v643_v17 = vmax.f32 %v519_v11, 0.0  ;;  %v675_v47 = vpack.c.bf16 %v645_v14, %v644_v18  ;;  %v540_v52 = vadd.f32 %v2366_v15, %v2868_v5 }
 0x1a2   :  { %v531_v19 = vpop.f32.mrf.mxu1 }
 0x1a3   :  { %v674_v25 = vpack.c.bf16 %v643_v17, %v642_v16  ;;  %v532_v50 = vadd.f32 %v2868_v5, %v531_v19  ;;  %v648_v61 = vmax.f32 %v540_v52, 0.0 }
 0x1a4   :  { %v2367_v39 = vpop.f32.mrf.mxu1 }
 0x1a5   :  { %v543_v51 = vadd.f32 %v2367_v39, %v2868_v5  ;;  %2396 = vmatprep.mubr.msk.bf16.mxu0 %vm150_vm0, %v674_v25  ;;  %v646_v59 = vmax.f32 %v532_v50, 0.0 }
 0x1a6   :  { %v534_v54 = vpop.f32.mrf.mxu1  ;;  %2397 = vmatmul.mubr.msk.bf16.vlgmr.msra.gmra.mxu0 %vm150_vm0, %v675_v47 }
 0x1a7   :  { %v535_v55 = vadd.f32 %v2868_v5, %v534_v54  ;;  %2465 = vmatpush3.bf16.msra.mxu0 %v2600_v2  ;;  %v649_v56 = vmax.f32 %v543_v51, 0.0 }
 0x1a8   :  { %v2370_v57 = vpop.f32.mrf.mxu1  ;;  %2466 = vmatprep.subr.bf16.mxu0 %v2601_v48 }
 0x1a9   :  { %v647_v60 = vmax.f32 %v535_v55, 0.0  ;;  %v677_v1 = vpack.c.bf16 %v649_v56, %v648_v61  ;;  %v556_v13 = vadd.f32 %v2370_v57, %v2868_v5 }
 0x1aa   :  { %v547_v62 = vpop.f32.mrf.mxu1 }
 0x1ab   :  { %v676_v63 = vpack.c.bf16 %v647_v60, %v646_v59  ;;  %2467 = vmatpush3.bf16.msra.mxu0 %v2601_v48  ;;  %v548_v12 = vadd.f32 %v2868_v5, %v547_v62  ;;  %v652_v27 = vmax.f32 %v556_v13, 0.0 }
 0x1ac   :  { %v2371_v49 = vpop.f32.mrf.mxu1 }
 0x1ad   :  { %v559_v58 = vadd.f32 %v2371_v49, %v2868_v5  ;;  %2400 = vmatprep.mubr.msk.bf16.mxu0 %vm150_vm0, %v676_v63  ;;  %v650_v22 = vmax.f32 %v548_v12, 0.0 }
 0x1ae   :  { %v550_v26 = vpop.f32.mrf.mxu1  ;;  %2401 = vmatmul.mubr.msk.bf16.gmra.mxu0 %vm150_vm0, %v677_v1 }
 0x1af   :  { %v551_v20 = vadd.f32 %v2868_v5, %v550_v26  ;;  %v653_v34 = vmax.f32 %v559_v58, 0.0 }
 0x1b0   :  { %v2374_v21 = vpop.f32.mrf.mxu1 }
 0x1b1   :  { %v651_v23 = vmax.f32 %v551_v20, 0.0  ;;  %v679_v31 = vpack.c.bf16 %v653_v34, %v652_v27  ;;  %v572_v35 = vadd.f32 %v2374_v21, %v2868_v5 }
 0x1b2   :  { %v563_v28 = vpop.f32.mrf.mxu1 }
 0x1b3   :  { %v678_v29 = vpack.c.bf16 %v651_v23, %v650_v22  ;;  %v564_v32 = vadd.f32 %v2868_v5, %v563_v28  ;;  %v656_v42 = vmax.f32 %v572_v35, 0.0 }
 0x1b4   :  { %v2375_v24 = vpop.f32.mrf.mxu1 }
 0x1b5   :  { %v575_v33 = vadd.f32 %v2375_v24, %v2868_v5  ;;  %2404 = vmatprep.mubr.msk.bf16.mxu0 %vm150_vm0, %v678_v29  ;;  %v654_v40 = vmax.f32 %v564_v32, 0.0 }
 0x1b6   :  { %v566_v43 = vpop.f32.mrf.mxu1  ;;  %2405 = vmatmul.mubr.msk.bf16.gmra.mxu0 %vm150_vm0, %v679_v31 }
 0x1b7   :  { %v567_v53 = vadd.f32 %v2868_v5, %v566_v43  ;;  %v657_v36 = vmax.f32 %v575_v33, 0.0 }
 0x1b8   :  { %v2378_v37 = vpop.f32.mrf.mxu1 }
 0x1b9   :  { %v655_v41 = vmax.f32 %v567_v53, 0.0  ;;  %v681_v46 = vpack.c.bf16 %v657_v36, %v656_v42  ;;  %v588_v2 = vadd.f32 %v2378_v37, %v2868_v5  ;;  %v2602_v37 = vld [vmem:[%s3284_s1 + $0x58] sm:$0xff]  }
 0x1ba   :  { %v579_v44 = vpop.f32.mrf.mxu1  ;;  %2500 = vmatprep.subr.bf16.mxu1 %v2602_v37 }
 0x1bb   :  { %v680_v45 = vpack.c.bf16 %v655_v41, %v654_v40  ;;  %v580_v38 = vadd.f32 %v2868_v5, %v579_v44  ;;  %v660_v10 = vmax.f32 %v588_v2, 0.0  ;;  %2501 = vmatpush3.bf16.msra.mxu1 %v2602_v37 }
 0x1bc   :  { %v2379_v0 = vpop.f32.mrf.mxu1 }
 0x1bd   :  { %v591_v30 = vadd.f32 %v2379_v0, %v2868_v5  ;;  %2408 = vmatprep.mubr.msk.bf16.mxu0 %vm150_vm0, %v680_v45  ;;  %v658_v8 = vmax.f32 %v580_v38, 0.0 }
 0x1be   :  { %v582_v3 = vpop.f32.mrf.mxu1  ;;  %2409 = vmatmul.mubr.msk.bf16.gmra.mxu0 %vm150_vm0, %v681_v46 }
 0x1bf   :  { %v583_v4 = vadd.f32 %v2868_v5, %v582_v3  ;;  %v661_v6 = vmax.f32 %v591_v30, 0.0 }
 0x1c0   :  { %v2382_v7 = vpop.f32.mrf.mxu1 }
 0x1c1   :  { %v659_v9 = vmax.f32 %v583_v4, 0.0  ;;  %v683_v15 = vpack.c.bf16 %v661_v6, %v660_v10  ;;  %v604_v19 = vadd.f32 %v2382_v7, %v2868_v5 }
 0x1c2   :  { %v595_v11 = vpop.f32.mrf.mxu1 }
 0x1c3   :  { %v682_v14 = vpack.c.bf16 %v659_v9, %v658_v8  ;;  %v596_v17 = vadd.f32 %v2868_v5, %v595_v11  ;;  %v664_v52 = vmax.f32 %v604_v19, 0.0 }
 0x1c4   :  { %v2383_v16 = vpop.f32.mrf.mxu1 }
 0x1c5   :  { %v607_v18 = vadd.f32 %v2383_v16, %v2868_v5  ;;  %2412 = vmatprep.mubr.msk.bf16.mxu0 %vm150_vm0, %v682_v14  ;;  %v662_v50 = vmax.f32 %v596_v17, 0.0  ;;  %v2940_v16 = vld [vmem:[%s3286_s2 + $0x2] ss:$0 sm:$0xff] }
 0x1c6   :  { %v598_v25 = vpop.f32.mrf.mxu1  ;;  %2413 = vmatmul.mubr.msk.bf16.gmra.mxu0 %vm150_vm0, %v683_v15 }
 0x1c7   :  { %v599_v47 = vadd.f32 %v2868_v5, %v598_v25  ;;  %v665_v39 = vmax.f32 %v607_v18, 0.0 }
 0x1c8   :  { %v2386_v48 = vpop.f32.mrf.mxu1 }
 0x1c9   :  { %v663_v51 = vmax.f32 %v599_v47, 0.0  ;;  %v685_v56 = vpack.c.bf16 %v665_v39, %v664_v52  ;;  %v620_v61 = vadd.f32 %v2386_v48, %v2868_v5 }
 0x1ca   :  { %v611_v54 = vpop.f32.mrf.mxu1 }
 0x1cb   :  { %v684_v55 = vpack.c.bf16 %v663_v51, %v662_v50  ;;  %v612_v59 = vadd.f32 %v2868_v5, %v611_v54  ;;  %v668_v13 = vmax.f32 %v620_v61, 0.0 }
 0x1cc   :  { %v2387_v57 = vpop.f32.mrf.mxu1 }
 0x1cd   :  { %v623_v60 = vadd.f32 %v2387_v57, %v2868_v5  ;;  %2416 = vmatprep.mubr.msk.bf16.mxu0 %vm150_vm0, %v684_v55  ;;  %v666_v12 = vmax.f32 %v612_v59, 0.0 }
 0x1ce   :  { %v614_v62 = vpop.f32.mrf.mxu1  ;;  %2417 = vmatmul.mubr.msk.bf16.gmra.mxu0 %vm150_vm0, %v685_v56 }
 0x1cf   :  { %v615_v63 = vadd.f32 %v2868_v5, %v614_v62  ;;  %v669_v1 = vmax.f32 %v623_v60, 0.0 }
 0x1d0   :  { %v2390_v49 = vpop.f32.mrf.mxu1 }
 0x1d1   :  { %v667_v58 = vmax.f32 %v615_v63, 0.0  ;;  %v687_v34 = vpack.c.bf16 %v669_v1, %v668_v13  ;;  %v636_v27 = vadd.f32 %v2390_v49, %v2868_v5 }
 0x1d2   :  { %v627_v26 = vpop.f32.mrf.mxu1 }
 0x1d3   :  { %v686_v20 = vpack.c.bf16 %v667_v58, %v666_v12  ;;  %v628_v22 = vadd.f32 %v2868_v5, %v627_v26  ;;  %v672_v33 = vmax.f32 %v636_v27, 0.0 }
 0x1d4   :  { %v2391_v21 = vpop.f32.mrf.mxu1 }
 0x1d5   :  { %v639_v23 = vadd.f32 %v2391_v21, %v2868_v5  ;;  %2420 = vmatprep.mubr.msk.bf16.mxu0 %vm150_vm0, %v686_v20  ;;  %v670_v24 = vmax.f32 %v628_v22, 0.0 }
 0x1d6   :  { %v630_v28 = vpop.f32.mrf.mxu1  ;;  %2421 = vmatmul.mubr.msk.bf16.gmra.mxu0 %vm150_vm0, %v687_v34 }
 0x1d7   :  { %v631_v29 = vadd.f32 %v2868_v5, %v630_v28  ;;  %v673_v31 = vmax.f32 %v639_v23, 0.0  ;;  %v2603_v5 = vld [vmem:[%s3284_s1 + $0x50] sm:$0xff]  }
 0x1d8   :  { %v2434_v53 = vpop.f32.mrf.mxu1  ;;  %2502 = vmatprep.subr.bf16.mxu1 %v2603_v5 }
 0x1d9   :  { %v671_v32 = vmax.f32 %v631_v29, 0.0  ;;  %v689_v43 = vpack.c.bf16 %v673_v31, %v672_v33  ;;  %2503 = vmatpush3.bf16.msra.mxu1 %v2603_v5 }
 0x1da   :  { %v967_v36 = vpop.f32.mrf.mxu1 }
 0x1db   :  { %v688_v35 = vpack.c.bf16 %v671_v32, %v670_v24 }
 0x1dc   :  { %v2435_v40 = vpop.f32.mrf.mxu1 }
 0x1dd   :  { %2424 = vmatprep.mubr.msk.bf16.mxu0 %vm150_vm0, %v688_v35 }
 0x1de   :  { %2425 = vmatmul.mubr.msk.bf16.gmra.mxu0 %vm150_vm0, %v689_v43  ;;  %v970_v41 = vpop.f32.mrf.mxu1 }
 0x1e0   :  { %v2438_v42 = vpop.f32.mrf.mxu1 }
 0x1e2   :  { %v983_v44 = vpop.f32.mrf.mxu1 }
 0x1e4   :  { %v2439_v45 = vpop.f32.mrf.mxu1 }
 0x1e6   :  { %v986_v46 = vpop.f32.mrf.mxu1 }
 0x1e8   :  { %v2442_v0 = vpop.f32.mrf.mxu1 }
 0x1ea   :  { %v999_v38 = vpop.f32.mrf.mxu1 }
 0x1ec   :  { %v2443_v30 = vpop.f32.mrf.mxu1 }
 0x1ee   :  { %v1002_v2 = vpop.f32.mrf.mxu1 }
 0x1f0   :  { %v2927_v3 = vpop.f32.mrf.mxu1 }
 0x1f2   :  { %v2929_v4 = vpop.f32.mrf.mxu1 }
 0x1f4   :  { %v2931_v6 = vpop.f32.mrf.mxu1 }
 0x1f6   :  { %v2933_v7 = vpop.f32.mrf.mxu1 }
 0x1f8   :  { %v2935_v10 = vpop.f32.mrf.mxu1 }
 0x1fa   :  { %v2942_v19 = vpop.f32.mrf.mxu1 }
 0x1fc   :  { %v2948_v55 = vpop.f32.mrf.mxu1 }
 0x1fe   :  { %v2950_v58 = vpop.f32.mrf.mxu1 }
 0x200   :  { %v2958_v28 = vpop.f32.mrf.mxu1 }
 0x202   :  { %v1047_v5 = vpop.f32.mrf.mxu1 }
 0x266   :  { %v2398_v8 = vpop.f32.mrf.mxu0 }
 0x267   :  { %v976_v14 = vadd.f32 %v2434_v53, %v2398_v8 }
 0x268   :  { %v794_v9 = vpop.f32.mrf.mxu0 }
 0x269   :  { %v968_v11 = vadd.f32 %v967_v36, %v794_v9  ;;  %v1104_v48 = vadd.f32 %v2940_v16, %v976_v14 }
 0x26a   :  { %v2399_v15 = vpop.f32.mrf.mxu0 }
 0x26b   :  { %v979_v17 = vadd.f32 %v2435_v40, %v2399_v15  ;;  %v1102_v25 = vadd.f32 %v2940_v16, %v968_v11  ;;  %v1136_v60 = vmax.f32 %v1104_v48, 0.0 }
 0x26c   :  { %v797_v18 = vpop.f32.mrf.mxu0 }
 0x26d   :  { %v1105_v47 = vadd.f32 %v2940_v16, %v979_v17  ;;  %v971_v39 = vadd.f32 %v970_v41, %v797_v18  ;;  %v1134_v56 = vmax.f32 %v1102_v25, 0.0 }
 0x26e   :  { %v2402_v50 = vpop.f32.mrf.mxu0 }
 0x26f   :  { %v1103_v51 = vadd.f32 %v2940_v16, %v971_v39  ;;  %v1137_v52 = vmax.f32 %v1105_v47, 0.0  ;;  %v992_v61 = vadd.f32 %v2438_v42, %v2402_v50 }
 0x270   :  { %v810_v54 = vpop.f32.mrf.mxu0 }
 0x271   :  { %v1135_v57 = vmax.f32 %v1103_v51, 0.0  ;;  %v984_v59 = vadd.f32 %v983_v44, %v810_v54  ;;  %v1167_v49 = vpack.c.bf16 %v1137_v52, %v1136_v60  ;;  %v1108_v34 = vadd.f32 %v2940_v16, %v992_v61 }
 0x272   :  { %v2403_v62 = vpop.f32.mrf.mxu0 }
 0x273   :  { %v1166_v63 = vpack.c.bf16 %v1135_v57, %v1134_v56  ;;  %v995_v1 = vadd.f32 %v2439_v45, %v2403_v62  ;;  %v1106_v13 = vadd.f32 %v2940_v16, %v984_v59  ;;  %v1140_v32 = vmax.f32 %v1108_v34, 0.0 }
 0x274   :  { %v813_v12 = vpop.f32.mrf.mxu0 }
 0x275   :  { %v1109_v26 = vadd.f32 %v2940_v16, %v995_v1  ;;  %v987_v20 = vadd.f32 %v986_v46, %v813_v12  ;;  %2468 = vmatprep.mubr.msk.bf16.mxu0 %vm150_vm0, %v1166_v63  ;;  %v1138_v29 = vmax.f32 %v1106_v13, 0.0 }
 0x276   :  { %v2406_v21 = vpop.f32.mrf.mxu0  ;;  %2469 = vmatmul.mubr.msk.bf16.vlgmr.msra.gmra.mxu0 %vm150_vm0, %v1167_v49 }
 0x277   :  { %v1107_v22 = vadd.f32 %v2940_v16, %v987_v20  ;;  %v1141_v23 = vmax.f32 %v1109_v26, 0.0  ;;  %v1008_v33 = vadd.f32 %v2442_v0, %v2406_v21 }
 0x278   :  { %v826_v27 = vpop.f32.mrf.mxu0 }
 0x279   :  { %v1139_v31 = vmax.f32 %v1107_v22, 0.0  ;;  %v1000_v24 = vadd.f32 %v999_v38, %v826_v27  ;;  %v1169_v36 = vpack.c.bf16 %v1141_v23, %v1140_v32  ;;  %v1112_v44 = vadd.f32 %v2940_v16, %v1008_v33 }
 0x27a   :  { %v2407_v35 = vpop.f32.mrf.mxu0 }
 0x27b   :  { %v1168_v43 = vpack.c.bf16 %v1139_v31, %v1138_v29  ;;  %v1011_v53 = vadd.f32 %v2443_v30, %v2407_v35  ;;  %v1110_v40 = vadd.f32 %v2940_v16, %v1000_v24  ;;  %v2455_v30 = vpop.f32.mrf.mxu1  ;;  %v1144_v14 = vmax.f32 %v1112_v44, 0.0 }
 0x27c   :  { %v829_v37 = vpop.f32.mrf.mxu0 }
 0x27d   :  { %v1113_v41 = vadd.f32 %v2940_v16, %v1011_v53  ;;  %v1003_v42 = vadd.f32 %v1002_v2, %v829_v37  ;;  %2472 = vmatprep.mubr.msk.bf16.mxu0 %vm150_vm0, %v1168_v43  ;;  %v1142_v8 = vmax.f32 %v1110_v40, 0.0  ;;  %v1050_v39 = vpop.f32.mrf.mxu1 }
 0x27e   :  { %v2410_v45 = vpop.f32.mrf.mxu0  ;;  %2473 = vmatmul.mubr.msk.bf16.gmra.mxu0 %vm150_vm0, %v1169_v36 }
 0x27f   :  { %v1111_v46 = vadd.f32 %v2940_v16, %v1003_v42  ;;  %v1145_v0 = vmax.f32 %v1113_v41, 0.0  ;;  %v1024_v15 = vadd.f32 %v2927_v3, %v2410_v45  ;;  %v2458_v56 = vpop.f32.mrf.mxu1 }
 0x280   :  { %v842_v38 = vpop.f32.mrf.mxu0 }
 0x281   :  { %v1143_v9 = vmax.f32 %v1111_v46, 0.0  ;;  %v1016_v11 = vadd.f32 %v2929_v4, %v842_v38  ;;  %v1171_v25 = vpack.c.bf16 %v1145_v0, %v1144_v14  ;;  %v1116_v4 = vadd.f32 %v2940_v16, %v1024_v15  ;;  %v1063_v13 = vpop.f32.mrf.mxu1 }
 0x282   :  { %v2411_v2 = vpop.f32.mrf.mxu0 }
 0x283   :  { %v1170_v17 = vpack.c.bf16 %v1143_v9, %v1142_v8  ;;  %v1027_v18 = vadd.f32 %v2931_v6, %v2411_v2  ;;  %v1114_v48 = vadd.f32 %v2940_v16, %v1016_v11  ;;  %v1148_v61 = vmax.f32 %v1116_v4, 0.0  ;;  %v2459_v23 = vpop.f32.mrf.mxu1 }
 0x284   :  { %v845_v47 = vpop.f32.mrf.mxu0 }
 0x285   :  { %v1117_v50 = vadd.f32 %v2940_v16, %v1027_v18  ;;  %v1019_v51 = vadd.f32 %v2933_v7, %v845_v47  ;;  %2476 = vmatprep.mubr.msk.bf16.mxu0 %vm150_vm0, %v1170_v17  ;;  %v1146_v57 = vmax.f32 %v1114_v48, 0.0  ;;  %v1066_v36 = vpop.f32.mrf.mxu1 }
 0x286   :  { %v2414_v52 = vpop.f32.mrf.mxu0  ;;  %2477 = vmatmul.mubr.msk.bf16.gmra.mxu0 %vm150_vm0, %v1171_v25 }
 0x287   :  { %v1115_v3 = vadd.f32 %v2940_v16, %v1019_v51  ;;  %v1149_v54 = vmax.f32 %v1117_v50, 0.0  ;;  %v1040_v62 = vadd.f32 %v2935_v10, %v2414_v52  ;;  %v2462_v46 = vpop.f32.mrf.mxu1 }
 0x288   :  { %v858_v6 = vpop.f32.mrf.mxu0 }
 0x289   :  { %v1147_v59 = vmax.f32 %v1115_v3, 0.0  ;;  %v1032_v60 = vadd.f32 %v2942_v19, %v858_v6  ;;  %v1173_v49 = vpack.c.bf16 %v1149_v54, %v1148_v61  ;;  %v1120_v19 = vadd.f32 %v2940_v16, %v1040_v62  ;;  %v1079_v17 = vpop.f32.mrf.mxu1 }
 0x28a   :  { %v2415_v7 = vpop.f32.mrf.mxu0 }
 0x28b   :  { %v1172_v63 = vpack.c.bf16 %v1147_v59, %v1146_v57  ;;  %v1043_v1 = vadd.f32 %v2948_v55, %v2415_v7  ;;  %v1118_v26 = vadd.f32 %v2940_v16, %v1032_v60  ;;  %v1152_v24 = vmax.f32 %v1120_v19, 0.0  ;;  %v2463_v52 = vpop.f32.mrf.mxu1 }
 0x28c   :  { %v861_v12 = vpop.f32.mrf.mxu0 }
 0x28d   :  { %v1121_v20 = vadd.f32 %v2940_v16, %v1043_v1  ;;  %v1035_v34 = vadd.f32 %v2950_v58, %v861_v12  ;;  %2480 = vmatprep.mubr.msk.bf16.mxu0 %vm150_vm0, %v1172_v63  ;;  %v1150_v27 = vmax.f32 %v1118_v26, 0.0  ;;  %v1082_v63 = vpop.f32.mrf.mxu1 }
 0x28e   :  { %v2418_v21 = vpop.f32.mrf.mxu0  ;;  %2481 = vmatmul.mubr.msk.bf16.gmra.mxu0 %vm150_vm0, %v1173_v49 }
 0x28f   :  { %v1119_v10 = vadd.f32 %v2940_v16, %v1035_v34  ;;  %v1153_v22 = vmax.f32 %v1121_v20, 0.0  ;;  %v1056_v32 = vadd.f32 %v2958_v28, %v2418_v21 }
 0x290   :  { %v874_v55 = vpop.f32.mrf.mxu0 }
 0x291   :  { %v1151_v29 = vmax.f32 %v1119_v10, 0.0  ;;  %v1048_v31 = vadd.f32 %v1047_v5, %v874_v55  ;;  %v1175_v43 = vpack.c.bf16 %v1153_v22, %v1152_v24  ;;  %v1124_v42 = vadd.f32 %v2940_v16, %v1056_v32 }
 0x292   :  { %v2419_v33 = vpop.f32.mrf.mxu0 }
 0x293   :  { %v1174_v58 = vpack.c.bf16 %v1151_v29, %v1150_v27  ;;  %v1059_v35 = vadd.f32 %v2455_v30, %v2419_v33  ;;  %v1122_v37 = vadd.f32 %v2940_v16, %v1048_v31  ;;  %v1156_v8 = vmax.f32 %v1124_v42, 0.0  ;;  %v2605_v27 = vld [vmem:[%s3284_s1 + $0x60] sm:$0xff]  }
 0x294   :  { %v877_v53 = vpop.f32.mrf.mxu0  ;;  %v3016_v31 = vld [vmem:[%s3286_s2 + $0x3] ss:$0 sm:$0xff] }
 0x295   :  { %v1125_v40 = vadd.f32 %v2940_v16, %v1059_v35  ;;  %v1051_v41 = vadd.f32 %v1050_v39, %v877_v53  ;;  %2484 = vmatprep.mubr.msk.bf16.mxu0 %vm150_vm0, %v1174_v58  ;;  %v1154_v0 = vmax.f32 %v1122_v37, 0.0 }
 0x296   :  { %v2422_v44 = vpop.f32.mrf.mxu0  ;;  %2485 = vmatmul.mubr.msk.bf16.gmra.mxu0 %vm150_vm0, %v1175_v43 }
 0x297   :  { %v1123_v28 = vadd.f32 %v2940_v16, %v1051_v41  ;;  %v1157_v5 = vmax.f32 %v1125_v40, 0.0  ;;  %v1072_v9 = vadd.f32 %v2458_v56, %v2422_v44 }
 0x298   :  { %v890_v45 = vpop.f32.mrf.mxu0 }
 0x299   :  { %v1155_v38 = vmax.f32 %v1123_v28, 0.0  ;;  %v1064_v30 = vadd.f32 %v1063_v13, %v890_v45  ;;  %v1177_v2 = vpack.c.bf16 %v1157_v5, %v1156_v8  ;;  %v1128_v48 = vadd.f32 %v2940_v16, %v1072_v9 }
 0x29a   :  { %v2423_v11 = vpop.f32.mrf.mxu0 }
 0x29b   :  { %v1176_v14 = vpack.c.bf16 %v1155_v38, %v1154_v0  ;;  %v1075_v15 = vadd.f32 %v2459_v23, %v2423_v11  ;;  %v1126_v25 = vadd.f32 %v2940_v16, %v1064_v30  ;;  %v1160_v57 = vmax.f32 %v1128_v48, 0.0  ;;  %v2604_v23 = vld [vmem:[%s3284_s1 + $0x68] sm:$0xff]  }
 0x29c   :  { %v893_v18 = vpop.f32.mrf.mxu0  ;;  %2536 = vmatprep.subr.bf16.mxu0 %v2604_v23 }
 0x29d   :  { %v1129_v47 = vadd.f32 %v2940_v16, %v1075_v15  ;;  %v1067_v39 = vadd.f32 %v1066_v36, %v893_v18  ;;  %2488 = vmatprep.mubr.msk.bf16.mxu0 %vm150_vm0, %v1176_v14  ;;  %v1158_v54 = vmax.f32 %v1126_v25, 0.0  ;;  %2537 = vmatpush3.bf16.msra.mxu0 %v2604_v23 }
 0x29e   :  { %v2426_v50 = vpop.f32.mrf.mxu0  ;;  %2489 = vmatmul.mubr.msk.bf16.gmra.mxu0 %vm150_vm0, %v1177_v2  ;;  %2538 = vmatprep.subr.bf16.mxu0 %v2605_v27 }
 0x29f   :  { %v1127_v51 = vadd.f32 %v2940_v16, %v1067_v39  ;;  %v1161_v4 = vmax.f32 %v1129_v47, 0.0  ;;  %v1088_v59 = vadd.f32 %v2462_v46, %v2426_v50 }
 0x2a0   :  { %v906_v3 = vpop.f32.mrf.mxu0 }
 0x2a1   :  { %v1159_v6 = vmax.f32 %v1127_v51, 0.0  ;;  %v1080_v56 = vadd.f32 %v1079_v17, %v906_v3  ;;  %v1179_v7 = vpack.c.bf16 %v1161_v4, %v1160_v57  ;;  %v1132_v26 = vadd.f32 %v2940_v16, %v1088_v59  ;;  %2539 = vmatpush3.bf16.msra.mxu0 %v2605_v27 }
 0x2a2   :  { %v2427_v60 = vpop.f32.mrf.mxu0 }
 0x2a3   :  { %v1178_v61 = vpack.c.bf16 %v1159_v6, %v1158_v54  ;;  %v1091_v62 = vadd.f32 %v2463_v52, %v2427_v60  ;;  %v1130_v49 = vadd.f32 %v2940_v16, %v1080_v56  ;;  %v1164_v10 = vmax.f32 %v1132_v26, 0.0 }
 0x2a4   :  { %v909_v1 = vpop.f32.mrf.mxu0 }
 0x2a5   :  { %v1133_v12 = vadd.f32 %v2940_v16, %v1091_v62  ;;  %v1083_v13 = vadd.f32 %v1082_v63, %v909_v1  ;;  %2492 = vmatprep.mubr.msk.bf16.mxu0 %vm150_vm0, %v1178_v61  ;;  %v1162_v19 = vmax.f32 %v1130_v49, 0.0 }
 0x2a6   :  { %2493 = vmatmul.mubr.msk.bf16.gmra.mxu0 %vm150_vm0, %v1179_v7 }
 0x2a7   :  { %v1131_v20 = vadd.f32 %v2940_v16, %v1083_v13  ;;  %v1165_v34 = vmax.f32 %v1133_v12, 0.0 }
 0x2a9   :  { %v1163_v21 = vmax.f32 %v1131_v20, 0.0  ;;  %v1181_v55 = vpack.c.bf16 %v1165_v34, %v1164_v10 }
 0x2ab   :  { %v1180_v22 = vpack.c.bf16 %v1163_v21, %v1162_v19 }
 0x2ad   :  { %2496 = vmatprep.mubr.msk.bf16.mxu0 %vm150_vm0, %v1180_v22 }
 0x2ae   :  { %2497 = vmatmul.mubr.msk.bf16.gmra.mxu0 %vm150_vm0, %v1181_v55 }
 0x336   :  { %v2470_v16 = vpop.f32.mrf.mxu0 }
 0x337   :  { %v1298_v58 = vadd.f32 %v2470_v16, %v3016_v31 }
 0x338   :  { %v1289_v29 = vpop.f32.mrf.mxu0 }
 0x339   :  { %v1290_v32 = vadd.f32 %v3016_v31, %v1289_v29  ;;  %v1418_v41 = vmax.f32 %v1298_v58, 0.0 }
 0x33a   :  { %v2471_v24 = vpop.f32.mrf.mxu0 }
 0x33b   :  { %v1301_v33 = vadd.f32 %v2471_v24, %v3016_v31  ;;  %v1416_v37 = vmax.f32 %v1290_v32, 0.0 }
 0x33c   :  { %v1292_v35 = vpop.f32.mrf.mxu0 }
 0x33d   :  { %v1293_v43 = vadd.f32 %v3016_v31, %v1292_v35  ;;  %v1419_v53 = vmax.f32 %v1301_v33, 0.0 }
 0x33e   :  { %v2474_v36 = vpop.f32.mrf.mxu0 }
 0x33f   :  { %v1417_v40 = vmax.f32 %v1293_v43, 0.0  ;;  %v1449_v28 = vpack.c.bf16 %v1419_v53, %v1418_v41  ;;  %v1314_v0 = vadd.f32 %v2474_v36, %v3016_v31 }
 0x340   :  { %v1305_v42 = vpop.f32.mrf.mxu0 }
 0x341   :  { %v1448_v44 = vpack.c.bf16 %v1417_v40, %v1416_v37  ;;  %v1306_v45 = vadd.f32 %v3016_v31, %v1305_v42  ;;  %v1422_v15 = vmax.f32 %v1314_v0, 0.0 }
 0x342   :  { %v2475_v5 = vpop.f32.mrf.mxu0 }
 0x343   :  { %v1317_v46 = vadd.f32 %v2475_v5, %v3016_v31  ;;  %2504 = vmatprep.mubr.msk.bf16.mxu1 %vm150_vm0, %v1448_v44  ;;  %v1420_v11 = vmax.f32 %v1306_v45, 0.0 }
 0x344   :  { %v1308_v38 = vpop.f32.mrf.mxu0  ;;  %2505 = vmatmul.mubr.msk.bf16.vlgmr.msra.gmra.mxu1 %vm150_vm0, %v1449_v28 }
 0x345   :  { %v1309_v30 = vadd.f32 %v3016_v31, %v1308_v38  ;;  %v1423_v8 = vmax.f32 %v1317_v46, 0.0 }
 0x346   :  { %v2478_v9 = vpop.f32.mrf.mxu0 }
 0x347   :  { %v1421_v14 = vmax.f32 %v1309_v30, 0.0  ;;  %v1451_v18 = vpack.c.bf16 %v1423_v8, %v1422_v15  ;;  %v1330_v48 = vadd.f32 %v2478_v9, %v3016_v31 }
 0x348   :  { %v1321_v2 = vpop.f32.mrf.mxu0 }
 0x349   :  { %v1450_v17 = vpack.c.bf16 %v1421_v14, %v1420_v11  ;;  %v1322_v47 = vadd.f32 %v3016_v31, %v1321_v2  ;;  %v1426_v6 = vmax.f32 %v1330_v48, 0.0 }
 0x34a   :  { %v2479_v25 = vpop.f32.mrf.mxu0 }
 0x34b   :  { %v1333_v39 = vadd.f32 %v2479_v25, %v3016_v31  ;;  %2508 = vmatprep.mubr.msk.bf16.mxu1 %vm150_vm0, %v1450_v17  ;;  %v1424_v3 = vmax.f32 %v1322_v47, 0.0 }
 0x34c   :  { %v1324_v50 = vpop.f32.mrf.mxu0  ;;  %2509 = vmatmul.mubr.msk.bf16.gmra.mxu1 %vm150_vm0, %v1451_v18 }
 0x34d   :  { %v1325_v51 = vadd.f32 %v3016_v31, %v1324_v50  ;;  %v1427_v4 = vmax.f32 %v1333_v39, 0.0 }
 0x34e   :  { %v2482_v52 = vpop.f32.mrf.mxu0 }
 0x34f   :  { %v1425_v54 = vmax.f32 %v1325_v51, 0.0  ;;  %v1453_v59 = vpack.c.bf16 %v1427_v4, %v1426_v6  ;;  %v1346_v7 = vadd.f32 %v2482_v52, %v3016_v31 }
 0x350   :  { %v1337_v56 = vpop.f32.mrf.mxu0 }
 0x351   :  { %v1452_v57 = vpack.c.bf16 %v1425_v54, %v1424_v3  ;;  %v1338_v61 = vadd.f32 %v3016_v31, %v1337_v56  ;;  %v1430_v20 = vmax.f32 %v1346_v7, 0.0 }
 0x352   :  { %v2483_v60 = vpop.f32.mrf.mxu0 }
 0x353   :  { %v1349_v62 = vadd.f32 %v2483_v60, %v3016_v31  ;;  %2512 = vmatprep.mubr.msk.bf16.mxu1 %vm150_vm0, %v1452_v57  ;;  %v1428_v13 = vmax.f32 %v1338_v61, 0.0 }
 0x354   :  { %v1340_v63 = vpop.f32.mrf.mxu0  ;;  %2513 = vmatmul.mubr.msk.bf16.gmra.mxu1 %vm150_vm0, %v1453_v59 }
 0x355   :  { %v1341_v1 = vadd.f32 %v3016_v31, %v1340_v63  ;;  %v1431_v49 = vmax.f32 %v1349_v62, 0.0 }
 0x356   :  { %v2486_v12 = vpop.f32.mrf.mxu0 }
 0x357   :  { %v1429_v26 = vmax.f32 %v1341_v1, 0.0  ;;  %v1455_v21 = vpack.c.bf16 %v1431_v49, %v1430_v20  ;;  %v1362_v23 = vadd.f32 %v2486_v12, %v3016_v31  ;;  %v3069_v12 = vld [vmem:[%s3286_s2 + $0x4] ss:$0 sm:$0xff] }
 0x358   :  { %v1353_v34 = vpop.f32.mrf.mxu0 }
 0x359   :  { %v1454_v19 = vpack.c.bf16 %v1429_v26, %v1428_v13  ;;  %v1354_v22 = vadd.f32 %v3016_v31, %v1353_v34  ;;  %v1434_v58 = vmax.f32 %v1362_v23, 0.0 }
 0x35a   :  { %v2487_v10 = vpop.f32.mrf.mxu0 }
 0x35b   :  { %v1365_v55 = vadd.f32 %v2487_v10, %v3016_v31  ;;  %2516 = vmatprep.mubr.msk.bf16.mxu1 %vm150_vm0, %v1454_v19  ;;  %v1432_v32 = vmax.f32 %v1354_v22, 0.0 }
 0x35c   :  { %v1356_v27 = vpop.f32.mrf.mxu0  ;;  %2517 = vmatmul.mubr.msk.bf16.gmra.mxu1 %vm150_vm0, %v1455_v21 }
 0x35d   :  { %v1357_v16 = vadd.f32 %v3016_v31, %v1356_v27  ;;  %v1435_v29 = vmax.f32 %v1365_v55, 0.0 }
 0x35e   :  { %v2490_v24 = vpop.f32.mrf.mxu0 }
 0x35f   :  { %v1433_v33 = vmax.f32 %v1357_v16, 0.0  ;;  %v1457_v53 = vpack.c.bf16 %v1435_v29, %v1434_v58  ;;  %v1378_v41 = vadd.f32 %v2490_v24, %v3016_v31 }
 0x360   :  { %v1369_v35 = vpop.f32.mrf.mxu0 }
 0x361   :  { %v1456_v43 = vpack.c.bf16 %v1433_v33, %v1432_v32  ;;  %v1370_v37 = vadd.f32 %v3016_v31, %v1369_v35  ;;  %v1438_v0 = vmax.f32 %v1378_v41, 0.0 }
 0x362   :  { %v2491_v36 = vpop.f32.mrf.mxu0 }
 0x363   :  { %v1381_v40 = vadd.f32 %v2491_v36, %v3016_v31  ;;  %2520 = vmatprep.mubr.msk.bf16.mxu1 %vm150_vm0, %v1456_v43  ;;  %v1436_v45 = vmax.f32 %v1370_v37, 0.0 }
 0x364   :  { %v1372_v42 = vpop.f32.mrf.mxu0  ;;  %2521 = vmatmul.mubr.msk.bf16.gmra.mxu1 %vm150_vm0, %v1457_v53 }
 0x365   :  { %v1373_v44 = vadd.f32 %v3016_v31, %v1372_v42  ;;  %v1439_v28 = vmax.f32 %v1381_v40, 0.0 }
 0x366   :  { %v2494_v5 = vpop.f32.mrf.mxu0 }
 0x367   :  { %v1437_v46 = vmax.f32 %v1373_v44, 0.0  ;;  %v1459_v8 = vpack.c.bf16 %v1439_v28, %v1438_v0  ;;  %v1394_v15 = vadd.f32 %v2494_v5, %v3016_v31 }
 0x368   :  { %v1385_v38 = vpop.f32.mrf.mxu0 }
 0x369   :  { %v1458_v30 = vpack.c.bf16 %v1437_v46, %v1436_v45  ;;  %v1386_v11 = vadd.f32 %v3016_v31, %v1385_v38  ;;  %v1442_v48 = vmax.f32 %v1394_v15, 0.0 }
 0x36a   :  { %v2495_v9 = vpop.f32.mrf.mxu0 }
 0x36b   :  { %v1397_v14 = vadd.f32 %v2495_v9, %v3016_v31  ;;  %2524 = vmatprep.mubr.msk.bf16.mxu1 %vm150_vm0, %v1458_v30  ;;  %v1440_v47 = vmax.f32 %v1386_v11, 0.0 }
 0x36c   :  { %v1388_v2 = vpop.f32.mrf.mxu0  ;;  %2525 = vmatmul.mubr.msk.bf16.gmra.mxu1 %vm150_vm0, %v1459_v8 }
 0x36d   :  { %v1389_v17 = vadd.f32 %v3016_v31, %v1388_v2  ;;  %v1443_v18 = vmax.f32 %v1397_v14, 0.0 }
 0x36e   :  { %v2498_v25 = vpop.f32.mrf.mxu0 }
 0x36f   :  { %v1441_v39 = vmax.f32 %v1389_v17, 0.0  ;;  %v1461_v4 = vpack.c.bf16 %v1443_v18, %v1442_v48  ;;  %v1410_v6 = vadd.f32 %v2498_v25, %v3016_v31 }
 0x370   :  { %v1401_v50 = vpop.f32.mrf.mxu0 }
 0x371   :  { %v1460_v51 = vpack.c.bf16 %v1441_v39, %v1440_v47  ;;  %v1402_v3 = vadd.f32 %v3016_v31, %v1401_v50  ;;  %v1446_v62 = vmax.f32 %v1410_v6, 0.0 }
 0x372   :  { %v2499_v52 = vpop.f32.mrf.mxu0 }
 0x373   :  { %v1413_v54 = vadd.f32 %v2499_v52, %v3016_v31  ;;  %2528 = vmatprep.mubr.msk.bf16.mxu1 %vm150_vm0, %v1460_v51  ;;  %v1444_v60 = vmax.f32 %v1402_v3, 0.0 }
 0x374   :  { %v1404_v56 = vpop.f32.mrf.mxu0  ;;  %2529 = vmatmul.mubr.msk.bf16.gmra.mxu1 %vm150_vm0, %v1461_v4 }
 0x375   :  { %v1405_v57 = vadd.f32 %v3016_v31, %v1404_v56  ;;  %v1447_v59 = vmax.f32 %v1413_v54, 0.0 }
 0x377   :  { %v1445_v61 = vmax.f32 %v1405_v57, 0.0  ;;  %v1463_v63 = vpack.c.bf16 %v1447_v59, %v1446_v62 }
 0x379   :  { %v1462_v7 = vpack.c.bf16 %v1445_v61, %v1444_v60 }
 0x37b   :  { %2532 = vmatprep.mubr.msk.bf16.mxu1 %vm150_vm0, %v1462_v7 }
 0x37c   :  { %2533 = vmatmul.mubr.msk.bf16.gmra.mxu1 %vm150_vm0, %v1463_v63 }
 0x404   :  { %v2506_v1 = vpop.f32.mrf.mxu1 }
 0x405   :  { %v1580_v20 = vadd.f32 %v2506_v1, %v3069_v12 }
 0x406   :  { %v1571_v49 = vpop.f32.mrf.mxu1 }
 0x407   :  { %v1572_v31 = vadd.f32 %v3069_v12, %v1571_v49  ;;  %v1700_v23 = vmax.f32 %v1580_v20, 0.0 }
 0x408   :  { %v2507_v13 = vpop.f32.mrf.mxu1 }
 0x409   :  { %v1583_v26 = vadd.f32 %v2507_v13, %v3069_v12  ;;  %v1698_v22 = vmax.f32 %v1572_v31, 0.0 }
 0x40a   :  { %v1574_v34 = vpop.f32.mrf.mxu1 }
 0x40b   :  { %v1575_v19 = vadd.f32 %v3069_v12, %v1574_v34  ;;  %v1701_v21 = vmax.f32 %v1583_v26, 0.0 }
 0x40c   :  { %v2510_v10 = vpop.f32.mrf.mxu1 }
 0x40d   :  { %v1699_v55 = vmax.f32 %v1575_v19, 0.0  ;;  %v1731_v29 = vpack.c.bf16 %v1701_v21, %v1700_v23  ;;  %v1596_v58 = vadd.f32 %v2510_v10, %v3069_v12 }
 0x40e   :  { %v1587_v27 = vpop.f32.mrf.mxu1 }
 0x40f   :  { %v1730_v16 = vpack.c.bf16 %v1699_v55, %v1698_v22  ;;  %v1588_v32 = vadd.f32 %v3069_v12, %v1587_v27  ;;  %v1704_v41 = vmax.f32 %v1596_v58, 0.0 }
 0x410   :  { %v2511_v24 = vpop.f32.mrf.mxu1 }
 0x411   :  { %v1599_v33 = vadd.f32 %v2511_v24, %v3069_v12  ;;  %2540 = vmatprep.mubr.msk.bf16.mxu0 %vm150_vm0, %v1730_v16  ;;  %v1702_v37 = vmax.f32 %v1588_v32, 0.0 }
 0x412   :  { %v1590_v35 = vpop.f32.mrf.mxu1  ;;  %2541 = vmatmul.mubr.msk.bf16.vlgmr.msra.gmra.mxu0 %vm150_vm0, %v1731_v29 }
 0x413   :  { %v1591_v43 = vadd.f32 %v3069_v12, %v1590_v35  ;;  %v1705_v53 = vmax.f32 %v1599_v33, 0.0 }
 0x414   :  { %v2514_v36 = vpop.f32.mrf.mxu1 }
 0x415   :  { %v1703_v40 = vmax.f32 %v1591_v43, 0.0  ;;  %v1733_v28 = vpack.c.bf16 %v1705_v53, %v1704_v41  ;;  %v1612_v0 = vadd.f32 %v2514_v36, %v3069_v12 }
 0x416   :  { %v1603_v42 = vpop.f32.mrf.mxu1 }
 0x417   :  { %v1732_v44 = vpack.c.bf16 %v1703_v40, %v1702_v37  ;;  %v1604_v45 = vadd.f32 %v3069_v12, %v1603_v42  ;;  %v1708_v15 = vmax.f32 %v1612_v0, 0.0 }
 0x418   :  { %v2515_v5 = vpop.f32.mrf.mxu1 }
 0x419   :  { %v1615_v46 = vadd.f32 %v2515_v5, %v3069_v12  ;;  %2544 = vmatprep.mubr.msk.bf16.mxu0 %vm150_vm0, %v1732_v44  ;;  %v1706_v11 = vmax.f32 %v1604_v45, 0.0 }
 0x41a   :  { %v1606_v38 = vpop.f32.mrf.mxu1  ;;  %2545 = vmatmul.mubr.msk.bf16.gmra.mxu0 %vm150_vm0, %v1733_v28 }
 0x41b   :  { %v1607_v30 = vadd.f32 %v3069_v12, %v1606_v38  ;;  %v1709_v8 = vmax.f32 %v1615_v46, 0.0 }
 0x41c   :  { %v2518_v9 = vpop.f32.mrf.mxu1 }
 0x41d   :  { %v1707_v14 = vmax.f32 %v1607_v30, 0.0  ;;  %v1735_v18 = vpack.c.bf16 %v1709_v8, %v1708_v15  ;;  %v1628_v48 = vadd.f32 %v2518_v9, %v3069_v12 }
 0x41e   :  { %v1619_v2 = vpop.f32.mrf.mxu1 }
 0x41f   :  { %v1734_v17 = vpack.c.bf16 %v1707_v14, %v1706_v11  ;;  %v1620_v47 = vadd.f32 %v3069_v12, %v1619_v2  ;;  %v1712_v6 = vmax.f32 %v1628_v48, 0.0 }
 0x420   :  { %v2519_v25 = vpop.f32.mrf.mxu1 }
 0x421   :  { %v1631_v39 = vadd.f32 %v2519_v25, %v3069_v12  ;;  %2548 = vmatprep.mubr.msk.bf16.mxu0 %vm150_vm0, %v1734_v17  ;;  %v1710_v3 = vmax.f32 %v1620_v47, 0.0 }
 0x422   :  { %v1622_v50 = vpop.f32.mrf.mxu1  ;;  %2549 = vmatmul.mubr.msk.bf16.gmra.mxu0 %vm150_vm0, %v1735_v18 }
 0x423   :  { %v1623_v51 = vadd.f32 %v3069_v12, %v1622_v50  ;;  %v1713_v4 = vmax.f32 %v1631_v39, 0.0 }
 0x424   :  { %v2522_v52 = vpop.f32.mrf.mxu1 }
 0x425   :  { %v1711_v54 = vmax.f32 %v1623_v51, 0.0  ;;  %v1737_v59 = vpack.c.bf16 %v1713_v4, %v1712_v6  ;;  %v1644_v7 = vadd.f32 %v2522_v52, %v3069_v12  ;;  %v3122_v51 = vld [vmem:[%s3286_s2 + $0x5] ss:$0 sm:$0xff] }
 0x426   :  { %v1635_v56 = vpop.f32.mrf.mxu1 }
 0x427   :  { %v1736_v57 = vpack.c.bf16 %v1711_v54, %v1710_v3  ;;  %v1636_v61 = vadd.f32 %v3069_v12, %v1635_v56  ;;  %v1716_v20 = vmax.f32 %v1644_v7, 0.0 }
 0x428   :  { %v2523_v60 = vpop.f32.mrf.mxu1 }
 0x429   :  { %v1647_v62 = vadd.f32 %v2523_v60, %v3069_v12  ;;  %2552 = vmatprep.mubr.msk.bf16.mxu0 %vm150_vm0, %v1736_v57  ;;  %v1714_v31 = vmax.f32 %v1636_v61, 0.0 }
 0x42a   :  { %v1638_v63 = vpop.f32.mrf.mxu1  ;;  %2553 = vmatmul.mubr.msk.bf16.gmra.mxu0 %vm150_vm0, %v1737_v59 }
 0x42b   :  { %v1639_v1 = vadd.f32 %v3069_v12, %v1638_v63  ;;  %v1717_v49 = vmax.f32 %v1647_v62, 0.0 }
 0x42c   :  { %v2526_v13 = vpop.f32.mrf.mxu1 }
 0x42d   :  { %v1715_v26 = vmax.f32 %v1639_v1, 0.0  ;;  %v1739_v21 = vpack.c.bf16 %v1717_v49, %v1716_v20  ;;  %v1660_v23 = vadd.f32 %v2526_v13, %v3069_v12 }
 0x42e   :  { %v1651_v34 = vpop.f32.mrf.mxu1 }
 0x42f   :  { %v1738_v19 = vpack.c.bf16 %v1715_v26, %v1714_v31  ;;  %v1652_v22 = vadd.f32 %v3069_v12, %v1651_v34  ;;  %v1720_v58 = vmax.f32 %v1660_v23, 0.0 }
 0x430   :  { %v2527_v10 = vpop.f32.mrf.mxu1 }
 0x431   :  { %v1663_v55 = vadd.f32 %v2527_v10, %v3069_v12  ;;  %2556 = vmatprep.mubr.msk.bf16.mxu0 %vm150_vm0, %v1738_v19  ;;  %v1718_v32 = vmax.f32 %v1652_v22, 0.0 }
 0x432   :  { %v1654_v27 = vpop.f32.mrf.mxu1  ;;  %2557 = vmatmul.mubr.msk.bf16.gmra.mxu0 %vm150_vm0, %v1739_v21 }
 0x433   :  { %v1655_v16 = vadd.f32 %v3069_v12, %v1654_v27  ;;  %v1721_v29 = vmax.f32 %v1663_v55, 0.0 }
 0x434   :  { %v2530_v24 = vpop.f32.mrf.mxu1 }
 0x435   :  { %v1719_v33 = vmax.f32 %v1655_v16, 0.0  ;;  %v1741_v53 = vpack.c.bf16 %v1721_v29, %v1720_v58  ;;  %v1676_v41 = vadd.f32 %v2530_v24, %v3069_v12 }
 0x436   :  { %v1667_v35 = vpop.f32.mrf.mxu1 }
 0x437   :  { %v1740_v43 = vpack.c.bf16 %v1719_v33, %v1718_v32  ;;  %v1668_v37 = vadd.f32 %v3069_v12, %v1667_v35  ;;  %v1724_v0 = vmax.f32 %v1676_v41, 0.0 }
 0x438   :  { %v2531_v36 = vpop.f32.mrf.mxu1 }
 0x439   :  { %v1679_v40 = vadd.f32 %v2531_v36, %v3069_v12  ;;  %2560 = vmatprep.mubr.msk.bf16.mxu0 %vm150_vm0, %v1740_v43  ;;  %v1722_v45 = vmax.f32 %v1668_v37, 0.0 }
 0x43a   :  { %v1670_v42 = vpop.f32.mrf.mxu1  ;;  %2561 = vmatmul.mubr.msk.bf16.gmra.mxu0 %vm150_vm0, %v1741_v53 }
 0x43b   :  { %v1671_v44 = vadd.f32 %v3069_v12, %v1670_v42  ;;  %v1725_v28 = vmax.f32 %v1679_v40, 0.0 }
 0x43c   :  { %v2534_v5 = vpop.f32.mrf.mxu1 }
 0x43d   :  { %v1723_v46 = vmax.f32 %v1671_v44, 0.0  ;;  %v1743_v8 = vpack.c.bf16 %v1725_v28, %v1724_v0  ;;  %v1692_v15 = vadd.f32 %v2534_v5, %v3069_v12 }
 0x43e   :  { %v1683_v38 = vpop.f32.mrf.mxu1 }
 0x43f   :  { %v1742_v30 = vpack.c.bf16 %v1723_v46, %v1722_v45  ;;  %v1684_v11 = vadd.f32 %v3069_v12, %v1683_v38  ;;  %v1728_v39 = vmax.f32 %v1692_v15, 0.0 }
 0x440   :  { %v2535_v9 = vpop.f32.mrf.mxu1 }
 0x441   :  { %v1695_v14 = vadd.f32 %v2535_v9, %v3069_v12  ;;  %2564 = vmatprep.mubr.msk.bf16.mxu0 %vm150_vm0, %v1742_v30  ;;  %v1726_v25 = vmax.f32 %v1684_v11, 0.0 }
 0x442   :  { %v1686_v2 = vpop.f32.mrf.mxu1  ;;  %2565 = vmatmul.mubr.msk.bf16.gmra.mxu0 %vm150_vm0, %v1743_v8 }
 0x443   :  { %v1687_v17 = vadd.f32 %v3069_v12, %v1686_v2  ;;  %v1729_v18 = vmax.f32 %v1695_v14, 0.0 }
 0x445   :  { %v1727_v47 = vmax.f32 %v1687_v17, 0.0  ;;  %v1745_v50 = vpack.c.bf16 %v1729_v18, %v1728_v39 }
 0x447   :  { %v1744_v48 = vpack.c.bf16 %v1727_v47, %v1726_v25 }
 0x449   :  { %2568 = vmatprep.mubr.msk.bf16.mxu0 %vm150_vm0, %v1744_v48 }
 0x44a   :  { %2569 = vmatmul.mubr.msk.bf16.gmra.mxu0 %vm150_vm0, %v1745_v50 }
 0x4d2   :  { %v2542_v4 = vpop.f32.mrf.mxu0 }
 0x4d3   :  { %v1862_v52 = vadd.f32 %v2542_v4, %v3122_v51 }
 0x4d4   :  { %v1853_v12 = vpop.f32.mrf.mxu0 }
 0x4d5   :  { %1983 = vst.msk [vmem:[%s3287_s3 + $0x10] sm:$0xff] %vm1980_vm1, %v1862_v52  ;;  %v1854_v3 = vadd.f32 %v3122_v51, %v1853_v12 }
 0x4d6   :  { %v2543_v54 = vpop.f32.mrf.mxu0 }
 0x4d7   :  { %1981 = vst.msk [vmem:[%s3287_s3] sm:$0xff] %vm1980_vm1, %v1854_v3  ;;  %v1865_v6 = vadd.f32 %v2543_v54, %v3122_v51 }
 0x4d8   :  { %v1856_v56 = vpop.f32.mrf.mxu0 }
 0x4d9   :  { %1984 = vst.msk [vmem:[%s3287_s3 + $0x18] sm:$0xff] %vm1980_vm1, %v1865_v6  ;;  %v1857_v57 = vadd.f32 %v3122_v51, %v1856_v56 }
 0x4da   :  { %v2546_v59 = vpop.f32.mrf.mxu0 }
 0x4db   :  { %1982 = vst.msk [vmem:[%s3287_s3 + $0x8] sm:$0xff] %vm1980_vm1, %v1857_v57  ;;  %v1878_v60 = vadd.f32 %v2546_v59, %v3122_v51 }
 0x4dc   :  { %v1869_v61 = vpop.f32.mrf.mxu0 }
 0x4dd   :  { %1987 = vst.msk [vmem:[%s3287_s3 + $0x30] sm:$0xff] %vm1980_vm1, %v1878_v60  ;;  %v1870_v62 = vadd.f32 %v3122_v51, %v1869_v61 }
 0x4de   :  { %v2547_v7 = vpop.f32.mrf.mxu0 }
 0x4df   :  { %1985 = vst.msk [vmem:[%s3287_s3 + $0x20] sm:$0xff] %vm1980_vm1, %v1870_v62  ;;  %v1881_v63 = vadd.f32 %v2547_v7, %v3122_v51 }
 0x4e0   :  { %v1872_v1 = vpop.f32.mrf.mxu0 }
 0x4e1   :  { %1988 = vst.msk [vmem:[%s3287_s3 + $0x38] sm:$0xff] %vm1980_vm1, %v1881_v63  ;;  %v1873_v49 = vadd.f32 %v3122_v51, %v1872_v1 }
 0x4e2   :  { %v2550_v13 = vpop.f32.mrf.mxu0 }
 0x4e3   :  { %1986 = vst.msk [vmem:[%s3287_s3 + $0x28] sm:$0xff] %vm1980_vm1, %v1873_v49  ;;  %v1894_v31 = vadd.f32 %v2550_v13, %v3122_v51 }
 0x4e4   :  { %v1885_v26 = vpop.f32.mrf.mxu0 }
 0x4e5   :  { %1991 = vst.msk [vmem:[%s3287_s3 + $0x50] sm:$0xff] %vm1980_vm1, %v1894_v31  ;;  %v1886_v20 = vadd.f32 %v3122_v51, %v1885_v26 }
 0x4e6   :  { %v2551_v34 = vpop.f32.mrf.mxu0 }
 0x4e7   :  { %1989 = vst.msk [vmem:[%s3287_s3 + $0x40] sm:$0xff] %vm1980_vm1, %v1886_v20  ;;  %v1897_v19 = vadd.f32 %v2551_v34, %v3122_v51 }
 0x4e8   :  { %v1888_v21 = vpop.f32.mrf.mxu0 }
 0x4e9   :  { %1992 = vst.msk [vmem:[%s3287_s3 + $0x58] sm:$0xff] %vm1980_vm1, %v1897_v19  ;;  %v1889_v10 = vadd.f32 %v3122_v51, %v1888_v21 }
 0x4ea   :  { %v2554_v22 = vpop.f32.mrf.mxu0 }
 0x4eb   :  { %1990 = vst.msk [vmem:[%s3287_s3 + $0x48] sm:$0xff] %vm1980_vm1, %v1889_v10  ;;  %v1910_v55 = vadd.f32 %v2554_v22, %v3122_v51 }
 0x4ec   :  { %v1901_v23 = vpop.f32.mrf.mxu0 }
 0x4ed   :  { %1995 = vst.msk [vmem:[%s3287_s3 + $0x70] sm:$0xff] %vm1980_vm1, %v1910_v55  ;;  %v1902_v27 = vadd.f32 %v3122_v51, %v1901_v23 }
 0x4ee   :  { %v2555_v16 = vpop.f32.mrf.mxu0 }
 0x4ef   :  { %1993 = vst.msk [vmem:[%s3287_s3 + $0x60] sm:$0xff] %vm1980_vm1, %v1902_v27  ;;  %v1913_v29 = vadd.f32 %v2555_v16, %v3122_v51 }
 0x4f0   :  { %v1904_v24 = vpop.f32.mrf.mxu0 }
 0x4f1   :  { %1996 = vst.msk [vmem:[%s3287_s3 + $0x78] sm:$0xff] %vm1980_vm1, %v1913_v29  ;;  %v1905_v32 = vadd.f32 %v3122_v51, %v1904_v24 }
 0x4f2   :  { %v2558_v33 = vpop.f32.mrf.mxu0 }
 0x4f3   :  { %1994 = vst.msk [vmem:[%s3287_s3 + $0x68] sm:$0xff] %vm1980_vm1, %v1905_v32  ;;  %v1926_v58 = vadd.f32 %v2558_v33, %v3122_v51 }
 0x4f4   :  { %v1917_v35 = vpop.f32.mrf.mxu0 }
 0x4f5   :  { %1999 = vst.msk [vmem:[%s3287_s3 + $0x90] sm:$0xff] %vm1980_vm1, %v1926_v58  ;;  %v1918_v43 = vadd.f32 %v3122_v51, %v1917_v35 }
 0x4f6   :  { %v2559_v53 = vpop.f32.mrf.mxu0 }
 0x4f7   :  { %1997 = vst.msk [vmem:[%s3287_s3 + $0x80] sm:$0xff] %vm1980_vm1, %v1918_v43  ;;  %v1929_v36 = vadd.f32 %v2559_v53, %v3122_v51 }
 0x4f8   :  { %v1920_v37 = vpop.f32.mrf.mxu0 }
 0x4f9   :  { %2000 = vst.msk [vmem:[%s3287_s3 + $0x98] sm:$0xff] %vm1980_vm1, %v1929_v36  ;;  %v1921_v40 = vadd.f32 %v3122_v51, %v1920_v37 }
 0x4fa   :  { %v2562_v41 = vpop.f32.mrf.mxu0 }
 0x4fb   :  { %1998 = vst.msk [vmem:[%s3287_s3 + $0x88] sm:$0xff] %vm1980_vm1, %v1921_v40  ;;  %v1942_v42 = vadd.f32 %v2562_v41, %v3122_v51 }
 0x4fc   :  { %v1933_v44 = vpop.f32.mrf.mxu0 }
 0x4fd   :  { %2003 = vst.msk [vmem:[%s3287_s3 + $0xb0] sm:$0xff] %vm1980_vm1, %v1942_v42  ;;  %v1934_v28 = vadd.f32 %v3122_v51, %v1933_v44 }
 0x4fe   :  { %v2563_v5 = vpop.f32.mrf.mxu0 }
 0x4ff   :  { %2001 = vst.msk [vmem:[%s3287_s3 + $0xa0] sm:$0xff] %vm1980_vm1, %v1934_v28  ;;  %v1945_v45 = vadd.f32 %v2563_v5, %v3122_v51 }
 0x500   :  { %v1936_v46 = vpop.f32.mrf.mxu0 }
 0x501   :  { %2004 = vst.msk [vmem:[%s3287_s3 + $0xb8] sm:$0xff] %vm1980_vm1, %v1945_v45  ;;  %v1937_v0 = vadd.f32 %v3122_v51, %v1936_v46 }
 0x502   :  { %v2566_v38 = vpop.f32.mrf.mxu0 }
 0x503   :  { %2002 = vst.msk [vmem:[%s3287_s3 + $0xa8] sm:$0xff] %vm1980_vm1, %v1937_v0  ;;  %v1958_v30 = vadd.f32 %v2566_v38, %v3122_v51 }
 0x504   :  { %v1949_v8 = vpop.f32.mrf.mxu0 }
 0x505   :  { %2007 = vst.msk [vmem:[%s3287_s3 + $0xd0] sm:$0xff] %vm1980_vm1, %v1958_v30  ;;  %v1950_v9 = vadd.f32 %v3122_v51, %v1949_v8 }
 0x506   :  { %v2567_v11 = vpop.f32.mrf.mxu0 }
 0x507   :  { %2005 = vst.msk [vmem:[%s3287_s3 + $0xc0] sm:$0xff] %vm1980_vm1, %v1950_v9  ;;  %v1961_v14 = vadd.f32 %v2567_v11, %v3122_v51 }
 0x508   :  { %v1952_v15 = vpop.f32.mrf.mxu0 }
 0x509   :  { %2008 = vst.msk [vmem:[%s3287_s3 + $0xd8] sm:$0xff] %vm1980_vm1, %v1961_v14  ;;  %v1953_v2 = vadd.f32 %v3122_v51, %v1952_v15 }
 0x50a   :  { %v2570_v17 = vpop.f32.mrf.mxu0 }
 0x50b   :  { %2006 = vst.msk [vmem:[%s3287_s3 + $0xc8] sm:$0xff] %vm1980_vm1, %v1953_v2  ;;  %v1974_v18 = vadd.f32 %v2570_v17, %v3122_v51 }
 0x50c   :  { %v1965_v25 = vpop.f32.mrf.mxu0 }
 0x50d   :  { %2011 = vst.msk [vmem:[%s3287_s3 + $0xf0] sm:$0xff] %vm1980_vm1, %v1974_v18  ;;  %v1966_v47 = vadd.f32 %v3122_v51, %v1965_v25 }
 0x50e   :  { %v2571_v39 = vpop.f32.mrf.mxu0 }
 0x50f   :  { %2009 = vst.msk [vmem:[%s3287_s3 + $0xe0] sm:$0xff] %vm1980_vm1, %v1966_v47  ;;  %v1977_v48 = vadd.f32 %v2571_v39, %v3122_v51 }
 0x510   :  { %v1968_v50 = vpop.f32.mrf.mxu0 }
 0x511   :  { %2012 = vst.msk [vmem:[%s3287_s3 + $0xf8] sm:$0xff] %vm1980_vm1, %v1977_v48  ;;  %v1969_v4 = vadd.f32 %v3122_v51, %v1968_v50 }
 0x513   :  { %2010 = vst.msk [vmem:[%s3287_s3 + $0xe8] sm:$0xff] %vm1980_vm1, %v1969_v4 }

</bundles_post_ra>
